<compile_context>
chip_gen: v7x
topology: tpu7x:2x2x1
jax: 0.10.0
libtpu: 0.0.40
codegen_flags: <defaults>
</compile_context>

<pallas_src>
import functools

import jax
import jax.numpy as jnp
from jax.experimental import pallas as pl
from jax.experimental.pallas import tpu as pltpu


# ----------------------------- in-kernel helpers -----------------------------

def _layernorm(t, gamma, beta, eps=1e-5):
    mu = jnp.mean(t, axis=-1, keepdims=True)
    var = jnp.mean((t - mu) ** 2, axis=-1, keepdims=True)
    return (t - mu) * jax.lax.rsqrt(var + eps) * gamma + beta


def _gelu_tanh(x):
    # tanh approximation of GELU (exact-erf GELU differs at ~1e-3 level).
    c = 0.7978845608028654  # sqrt(2/pi)
    return 0.5 * x * (1.0 + jnp.tanh(c * (x + 0.044715 * x * x * x)))


def _cross_attention(xq, xc, mask2d,
                     ln_q_g, ln_q_b, ln_c_g, ln_c_b,
                     wq_t, wk_t, wv_t, wo_h, *, heads, dim_head):
    """Pre-LN multi-head cross attention, heads batched (no per-head loop).

    xq: (n, d) queries, xc: (nc, d) context, mask2d: (n, nc) bool.
    wq_t/wk_t/wv_t: (heads*dim_head, d)  (transposed projections, head-major rows)
    wo_h:           (heads, dim_head, d) (output projection split per head)
    Returns (n, d) attention output (residual added by caller).
    """
    n = xq.shape[0]
    nc = xc.shape[0]
    qn = _layernorm(xq, ln_q_g, ln_q_b)
    cn = _layernorm(xc, ln_c_g, ln_c_b)

    # Single full-width projection matmuls, contracting the feature dim of both
    # operands (A @ B^T pattern) -> head-major (h*dh, seq) results.
    ct_last = (((1,), (1,)), ((), ()))
    q_t = jax.lax.dot_general(wq_t, qn, ct_last, preferred_element_type=jnp.float32)
    k_t = jax.lax.dot_general(wk_t, cn, ct_last, preferred_element_type=jnp.float32)
    v_t = jax.lax.dot_general(wv_t, cn, ct_last, preferred_element_type=jnp.float32)

    # (h*dh, seq) -> (h, dh, seq) is a free major-dim split; swap last two dims to
    # get the canonical (h, seq, dh) batched-attention layout.
    q = jnp.swapaxes(q_t.reshape(heads, dim_head, n), 1, 2)    # (h, n, dh)
    k = jnp.swapaxes(k_t.reshape(heads, dim_head, nc), 1, 2)   # (h, nc, dh)
    v = jnp.swapaxes(v_t.reshape(heads, dim_head, nc), 1, 2)   # (h, nc, dh)

    scale = dim_head ** -0.5
    s = jnp.einsum('hnk,hck->hnc', q, k,
                   preferred_element_type=jnp.float32) * scale   # (h, n, nc)
    s = jnp.where(mask2d[None, :, :], s, jnp.float32(-1e9))
    s = s - jnp.max(s, axis=-1, keepdims=True)
    p = jnp.exp(s)
    p = p * pl.reciprocal(jnp.sum(p, axis=-1, keepdims=True), approx=True)

    o = jnp.einsum('hnc,hck->hnk', p, v,
                   preferred_element_type=jnp.float32)            # (h, n, dh)
    out_h = jnp.einsum('hnk,hkd->hnd', o, wo_h,
                       preferred_element_type=jnp.float32)        # (h, n, d)
    return jnp.sum(out_h, axis=0)                                 # (n, d)


def _geglu_ff(x, ln_g, ln_b, w1_val, w1_gate, w2):
    """Pre-LN GEGLU feed-forward: LN -> (val, gate) matmuls -> val*gelu(gate) -> W2."""
    xn = _layernorm(x, ln_g, ln_b)
    val = jnp.dot(xn, w1_val, preferred_element_type=jnp.float32)
    gate = jnp.dot(xn, w1_gate, preferred_element_type=jnp.float32)
    h = val * _gelu_tanh(gate)
    return jnp.dot(h, w2, preferred_element_type=jnp.float32)


# ------------------------------ fused block kernel ----------------------------
# One grid step == one batch element; the entire f -> k -> j -> g chain runs with
# intermediates kept on-chip and all parameters loaded once.

def _block_kernel(x_ref, m_ref, mva_ref, mav_ref,
                  # f: video queries <- audio context
                  f_lnqg, f_lnqb, f_lncg, f_lncb, f_wqt, f_wkt, f_wvt, f_wo,
                  # k: video feed-forward
                  k_lng, k_lnb, k_w1v, k_w1g, k_w2,
                  # j: audio queries <- (updated) video context
                  j_lnqg, j_lnqb, j_lncg, j_lncb, j_wqt, j_wkt, j_wvt, j_wo,
                  # g: audio feed-forward
                  g_lng, g_lnb, g_w1v, g_w1g, g_w2,
                  outx_ref, outm_ref, *, heads, dim_head, dim):
    x = x_ref[0].astype(jnp.float32)      # (nv, 2*dim)
    m = m_ref[0].astype(jnp.float32)      # (na, 2*dim)
    x1, x2 = x[:, :dim], x[:, dim:]
    m1, m2 = m[:, :dim], m[:, dim:]
    mask_va = mva_ref[0] > 0.0            # (nv, na)
    mask_av = mav_ref[0] > 0.0            # (na, nv)

    y1 = x1 + _cross_attention(
        x2, m2, mask_va,
        f_lnqg[...], f_lnqb[...], f_lncg[...], f_lncb[...],
        f_wqt[...], f_wkt[...], f_wvt[...], f_wo[...],
        heads=heads, dim_head=dim_head)
    y2 = x2 + _geglu_ff(y1, k_lng[...], k_lnb[...],
                        k_w1v[...], k_w1g[...], k_w2[...])
    n1 = m1 + _cross_attention(
        m2, y2, mask_av,
        j_lnqg[...], j_lnqb[...], j_lncg[...], j_lncb[...],
        j_wqt[...], j_wkt[...], j_wvt[...], j_wo[...],
        heads=heads, dim_head=dim_head)
    n2 = m2 + _geglu_ff(n1, g_lng[...], g_lnb[...],
                        g_w1v[...], g_w1g[...], g_w2[...])

    outx_ref[0] = jnp.concatenate([y1, y2], axis=-1).astype(outx_ref.dtype)
    outm_ref[0] = jnp.concatenate([n1, n2], axis=-1).astype(outm_ref.dtype)


# ------------------------------ block forward ---------------------------------

def reversible_cross_modality_attn_block(x, m, params, *, video_mask=None,
                                         audio_mask=None, heads, dim_head,
                                         ff_hidden):
    """Forward pass of ReversibleCrossModalityAttnBlock (inference semantics).

    x: (b, n_video, 2*dim) video stream; m: (b, n_audio, 2*dim) audio stream.
    """
    b, nv, two_d = x.shape
    _, na, _ = m.shape
    dim = two_d // 2
    inner = heads * dim_head

    if video_mask is None:
        video_mask = jnp.ones((b, nv), jnp.float32)
    if audio_mask is None:
        audio_mask = jnp.ones((b, na), jnp.float32)
    video_mask = video_mask.astype(jnp.float32)
    audio_mask = audio_mask.astype(jnp.float32)
    # Lane-dense 2-D masks, precomputed once per call.
    mask_va = video_mask[:, :, None] * audio_mask[:, None, :]   # (b, nv, na)
    mask_av = audio_mask[:, :, None] * video_mask[:, None, :]   # (b, na, nv)

    def attn_operands(p):
        return (p["ln_x_g"], p["ln_x_b"], p["ln_c_g"], p["ln_c_b"],
                p["wq"].T, p["wk"].T, p["wv"].T,               # (inner, dim)
                p["wo"].reshape(heads, dim_head, dim))         # (h, dh, dim)

    def ff_operands(p):
        return (p["ln_g"], p["ln_b"],
                p["w1"][:, :ff_hidden], p["w1"][:, ff_hidden:], p["w2"])

    operands = (x, m, mask_va, mask_av,
                *attn_operands(params["f"]), *ff_operands(params["k"]),
                *attn_operands(params["j"]), *ff_operands(params["g"]))

    per_b = lambda i: (i, 0, 0)

    def rep_spec(arr):
        nd = arr.ndim
        return pl.BlockSpec(arr.shape, lambda i, _nd=nd: (0,) * _nd)

    in_specs = [
        pl.BlockSpec((1, nv, two_d), per_b),    # x
        pl.BlockSpec((1, na, two_d), per_b),    # m
        pl.BlockSpec((1, nv, na), per_b),       # mask video->audio
        pl.BlockSpec((1, na, nv), per_b),       # mask audio->video
    ] + [rep_spec(a) for a in operands[4:]]     # all params, loaded once per step

    kern = functools.partial(_block_kernel, heads=heads, dim_head=dim_head,
                             dim=dim)

    out_x, out_m = pl.pallas_call(
        kern,
        out_shape=(jax.ShapeDtypeStruct((b, nv, two_d), x.dtype),
                   jax.ShapeDtypeStruct((b, na, two_d), m.dtype)),
        grid=(b,),
        in_specs=in_specs,
        out_specs=[pl.BlockSpec((1, nv, two_d), per_b),
                   pl.BlockSpec((1, na, two_d), per_b)],
        compiler_params=pltpu.CompilerParams(
            dimension_semantics=("parallel",)),   # batch is independent (v7x 2 TCs)
    )(*operands)
    return out_x, out_m


# ------------------------------ parameter init --------------------------------

def init_attn_params(key, dim, inner):
    k1, k2, k3, k4 = jax.random.split(key, 4)
    s = 0.02
    return {
        "ln_x_g": jnp.ones((1, dim), jnp.float32),
        "ln_x_b": jnp.zeros((1, dim), jnp.float32),
        "ln_c_g": jnp.ones((1, dim), jnp.float32),
        "ln_c_b": jnp.zeros((1, dim), jnp.float32),
        "wq": s * jax.random.normal(k1, (dim, inner), jnp.float32),
        "wk": s * jax.random.normal(k2, (dim, inner), jnp.float32),
        "wv": s * jax.random.normal(k3, (dim, inner), jnp.float32),
        "wo": s * jax.random.normal(k4, (inner, dim), jnp.float32),
    }


def init_ff_params(key, dim, hidden):
    k1, k2 = jax.random.split(key, 2)
    s = 0.02
    return {
        "ln_g": jnp.ones((1, dim), jnp.float32),
        "ln_b": jnp.zeros((1, dim), jnp.float32),
        "w1": s * jax.random.normal(k1, (dim, 2 * hidden), jnp.float32),
        "w2": s * jax.random.normal(k2, (hidden, dim), jnp.float32),
    }


if __name__ == "__main__":
    # Small shapes consistent with the module: per-stream dim = 32 (so the
    # chunk-dim-2 feature size is 64), 16 video tokens, 8 audio tokens.
    batch = 2
    dim = 32
    n_video = 16
    n_audio = 8
    heads = 4
    dim_head = 8
    ff_mult = 4
    ff_hidden = dim * ff_mult

    key = jax.random.PRNGKey(0)
    kx, km_, kf, kg, kj, kk = jax.random.split(key, 6)

    x = jax.random.normal(kx, (batch, n_video, 2 * dim), jnp.float32)
    m = jax.random.normal(km_, (batch, n_audio, 2 * dim), jnp.float32)
    video_mask = jnp.ones((batch, n_video), jnp.float32)
    audio_mask = jnp.ones((batch, n_audio), jnp.float32)

    params = {
        "f": init_attn_params(kf, dim, heads * dim_head),    # video <- audio attn
        "g": init_ff_params(kg, dim, ff_hidden),             # audio FF
        "j": init_attn_params(kj, dim, heads * dim_head),    # audio <- video attn
        "k": init_ff_params(kk, dim, ff_hidden),             # video FF
    }

    fwd = jax.jit(functools.partial(
        reversible_cross_modality_attn_block,
        heads=heads, dim_head=dim_head, ff_hidden=ff_hidden))

    out_x, out_m = fwd(x, m, params, video_mask=video_mask,
                       audio_mask=audio_mask)
    jax.block_until_ready((out_x, out_m))

    assert out_x.shape == (batch, n_video, 2 * dim)
    assert out_m.shape == (batch, n_audio, 2 * dim)
    assert jnp.all(jnp.isfinite(out_x)) and jnp.all(jnp.isfinite(out_m))
    print("KERNEL_OK")
</pallas_src>

<mosaic_0001>
module attributes {stable_mosaic.version = 11 : i64} {
  func.func @_block_kernel(%arg0: i32, %arg1: memref<1x16x64xf32, #tpu.memory_space<vmem>>, %arg2: memref<1x8x64xf32, #tpu.memory_space<vmem>>, %arg3: memref<1x16x8xf32, #tpu.memory_space<vmem>>, %arg4: memref<1x8x16xf32, #tpu.memory_space<vmem>>, %arg5: memref<1x32xf32, #tpu.memory_space<vmem>>, %arg6: memref<1x32xf32, #tpu.memory_space<vmem>>, %arg7: memref<1x32xf32, #tpu.memory_space<vmem>>, %arg8: memref<1x32xf32, #tpu.memory_space<vmem>>, %arg9: memref<32x32xf32, #tpu.memory_space<vmem>>, %arg10: memref<32x32xf32, #tpu.memory_space<vmem>>, %arg11: memref<32x32xf32, #tpu.memory_space<vmem>>, %arg12: memref<4x8x32xf32, #tpu.memory_space<vmem>>, %arg13: memref<1x32xf32, #tpu.memory_space<vmem>>, %arg14: memref<1x32xf32, #tpu.memory_space<vmem>>, %arg15: memref<32x128xf32, #tpu.memory_space<vmem>>, %arg16: memref<32x128xf32, #tpu.memory_space<vmem>>, %arg17: memref<128x32xf32, #tpu.memory_space<vmem>>, %arg18: memref<1x32xf32, #tpu.memory_space<vmem>>, %arg19: memref<1x32xf32, #tpu.memory_space<vmem>>, %arg20: memref<1x32xf32, #tpu.memory_space<vmem>>, %arg21: memref<1x32xf32, #tpu.memory_space<vmem>>, %arg22: memref<32x32xf32, #tpu.memory_space<vmem>>, %arg23: memref<32x32xf32, #tpu.memory_space<vmem>>, %arg24: memref<32x32xf32, #tpu.memory_space<vmem>>, %arg25: memref<4x8x32xf32, #tpu.memory_space<vmem>>, %arg26: memref<1x32xf32, #tpu.memory_space<vmem>>, %arg27: memref<1x32xf32, #tpu.memory_space<vmem>>, %arg28: memref<32x128xf32, #tpu.memory_space<vmem>>, %arg29: memref<32x128xf32, #tpu.memory_space<vmem>>, %arg30: memref<128x32xf32, #tpu.memory_space<vmem>>, %arg31: memref<1x16x64xf32, #tpu.memory_space<vmem>>, %arg32: memref<1x8x64xf32, #tpu.memory_space<vmem>>) attributes {dimension_semantics = [#tpu.dimension_semantics<parallel>], iteration_bounds = array<i64: 2>, scalar_prefetch = 0 : i64, scratch_operands = 0 : i64, tpu.core_type = #tpu.core_type<tc>, window_params = [{transform_indices = @transform_0, window_bounds = array<i64: 1, 16, 64>}, {transform_indices = @transform_1, window_bounds = array<i64: 1, 8, 64>}, {transform_indices = @transform_2, window_bounds = array<i64: 1, 16, 8>}, {transform_indices = @transform_3, window_bounds = array<i64: 1, 8, 16>}, {pipeline_mode = #tpu.pipeline_mode<synchronous>, transform_indices = @transform_4, window_bounds = array<i64: 1, 32>}, {pipeline_mode = #tpu.pipeline_mode<synchronous>, transform_indices = @transform_5, window_bounds = array<i64: 1, 32>}, {pipeline_mode = #tpu.pipeline_mode<synchronous>, transform_indices = @transform_6, window_bounds = array<i64: 1, 32>}, {pipeline_mode = #tpu.pipeline_mode<synchronous>, transform_indices = @transform_7, window_bounds = array<i64: 1, 32>}, {pipeline_mode = #tpu.pipeline_mode<synchronous>, transform_indices = @transform_8, window_bounds = array<i64: 32, 32>}, {pipeline_mode = #tpu.pipeline_mode<synchronous>, transform_indices = @transform_9, window_bounds = array<i64: 32, 32>}, {pipeline_mode = #tpu.pipeline_mode<synchronous>, transform_indices = @transform_10, window_bounds = array<i64: 32, 32>}, {pipeline_mode = #tpu.pipeline_mode<synchronous>, transform_indices = @transform_11, window_bounds = array<i64: 4, 8, 32>}, {pipeline_mode = #tpu.pipeline_mode<synchronous>, transform_indices = @transform_12, window_bounds = array<i64: 1, 32>}, {pipeline_mode = #tpu.pipeline_mode<synchronous>, transform_indices = @transform_13, window_bounds = array<i64: 1, 32>}, {pipeline_mode = #tpu.pipeline_mode<synchronous>, transform_indices = @transform_14, window_bounds = array<i64: 32, 128>}, {pipeline_mode = #tpu.pipeline_mode<synchronous>, transform_indices = @transform_15, window_bounds = array<i64: 32, 128>}, {pipeline_mode = #tpu.pipeline_mode<synchronous>, transform_indices = @transform_16, window_bounds = array<i64: 128, 32>}, {pipeline_mode = #tpu.pipeline_mode<synchronous>, transform_indices = @transform_17, window_bounds = array<i64: 1, 32>}, {pipeline_mode = #tpu.pipeline_mode<synchronous>, transform_indices = @transform_18, window_bounds = array<i64: 1, 32>}, {pipeline_mode = #tpu.pipeline_mode<synchronous>, transform_indices = @transform_19, window_bounds = array<i64: 1, 32>}, {pipeline_mode = #tpu.pipeline_mode<synchronous>, transform_indices = @transform_20, window_bounds = array<i64: 1, 32>}, {pipeline_mode = #tpu.pipeline_mode<synchronous>, transform_indices = @transform_21, window_bounds = array<i64: 32, 32>}, {pipeline_mode = #tpu.pipeline_mode<synchronous>, transform_indices = @transform_22, window_bounds = array<i64: 32, 32>}, {pipeline_mode = #tpu.pipeline_mode<synchronous>, transform_indices = @transform_23, window_bounds = array<i64: 32, 32>}, {pipeline_mode = #tpu.pipeline_mode<synchronous>, transform_indices = @transform_24, window_bounds = array<i64: 4, 8, 32>}, {pipeline_mode = #tpu.pipeline_mode<synchronous>, transform_indices = @transform_25, window_bounds = array<i64: 1, 32>}, {pipeline_mode = #tpu.pipeline_mode<synchronous>, transform_indices = @transform_26, window_bounds = array<i64: 1, 32>}, {pipeline_mode = #tpu.pipeline_mode<synchronous>, transform_indices = @transform_27, window_bounds = array<i64: 32, 128>}, {pipeline_mode = #tpu.pipeline_mode<synchronous>, transform_indices = @transform_28, window_bounds = array<i64: 32, 128>}, {pipeline_mode = #tpu.pipeline_mode<synchronous>, transform_indices = @transform_29, window_bounds = array<i64: 128, 32>}, {transform_indices = @transform_30, window_bounds = array<i64: 1, 16, 64>}, {transform_indices = @transform_31, window_bounds = array<i64: 1, 8, 64>}]} {
    %c0 = arith.constant 0 : index
    %c0_0 = arith.constant 0 : index
    %c0_1 = arith.constant 0 : index
    %0 = vector.load %arg1[%c0, %c0_0, %c0_1] : memref<1x16x64xf32, #tpu.memory_space<vmem>>, vector<1x16x64xf32>
    %1 = vector.shape_cast %0 : vector<1x16x64xf32> to vector<16x64xf32>
    %c0_2 = arith.constant 0 : index
    %c0_3 = arith.constant 0 : index
    %c0_4 = arith.constant 0 : index
    %2 = vector.load %arg2[%c0_2, %c0_3, %c0_4] : memref<1x8x64xf32, #tpu.memory_space<vmem>>, vector<1x8x64xf32>
    %3 = vector.shape_cast %2 : vector<1x8x64xf32> to vector<8x64xf32>
    %4 = vector.extract_strided_slice %1 {offsets = [0, 0], sizes = [16, 32], strides = [1, 1]} : vector<16x64xf32> to vector<16x32xf32>
    %5 = vector.extract_strided_slice %1 {offsets = [0, 32], sizes = [16, 32], strides = [1, 1]} : vector<16x64xf32> to vector<16x32xf32>
    %6 = vector.extract_strided_slice %3 {offsets = [0, 0], sizes = [8, 32], strides = [1, 1]} : vector<8x64xf32> to vector<8x32xf32>
    %7 = vector.extract_strided_slice %3 {offsets = [0, 32], sizes = [8, 32], strides = [1, 1]} : vector<8x64xf32> to vector<8x32xf32>
    %c0_5 = arith.constant 0 : index
    %c0_6 = arith.constant 0 : index
    %c0_7 = arith.constant 0 : index
    %8 = vector.load %arg3[%c0_5, %c0_6, %c0_7] : memref<1x16x8xf32, #tpu.memory_space<vmem>>, vector<1x16x8xf32>
    %9 = vector.shape_cast %8 : vector<1x16x8xf32> to vector<16x8xf32>
    %cst = arith.constant 0.000000e+00 : f32
    %10 = vector.broadcast %cst : f32 to vector<16x8xf32>
    %11 = arith.cmpf ogt, %9, %10 : vector<16x8xf32>
    %c0_8 = arith.constant 0 : index
    %c0_9 = arith.constant 0 : index
    %c0_10 = arith.constant 0 : index
    %12 = vector.load %arg4[%c0_8, %c0_9, %c0_10] : memref<1x8x16xf32, #tpu.memory_space<vmem>>, vector<1x8x16xf32>
    %13 = vector.shape_cast %12 : vector<1x8x16xf32> to vector<8x16xf32>
    %cst_11 = arith.constant 0.000000e+00 : f32
    %14 = vector.broadcast %cst_11 : f32 to vector<8x16xf32>
    %15 = arith.cmpf ogt, %13, %14 : vector<8x16xf32>
    %c0_12 = arith.constant 0 : index
    %c0_13 = arith.constant 0 : index
    %16 = vector.load %arg5[%c0_12, %c0_13] : memref<1x32xf32, #tpu.memory_space<vmem>>, vector<1x32xf32>
    %c0_14 = arith.constant 0 : index
    %c0_15 = arith.constant 0 : index
    %17 = vector.load %arg6[%c0_14, %c0_15] : memref<1x32xf32, #tpu.memory_space<vmem>>, vector<1x32xf32>
    %c0_16 = arith.constant 0 : index
    %c0_17 = arith.constant 0 : index
    %18 = vector.load %arg7[%c0_16, %c0_17] : memref<1x32xf32, #tpu.memory_space<vmem>>, vector<1x32xf32>
    %c0_18 = arith.constant 0 : index
    %c0_19 = arith.constant 0 : index
    %19 = vector.load %arg8[%c0_18, %c0_19] : memref<1x32xf32, #tpu.memory_space<vmem>>, vector<1x32xf32>
    %c0_20 = arith.constant 0 : index
    %c0_21 = arith.constant 0 : index
    %20 = vector.load %arg9[%c0_20, %c0_21] : memref<32x32xf32, #tpu.memory_space<vmem>>, vector<32x32xf32>
    %c0_22 = arith.constant 0 : index
    %c0_23 = arith.constant 0 : index
    %21 = vector.load %arg10[%c0_22, %c0_23] : memref<32x32xf32, #tpu.memory_space<vmem>>, vector<32x32xf32>
    %c0_24 = arith.constant 0 : index
    %c0_25 = arith.constant 0 : index
    %22 = vector.load %arg11[%c0_24, %c0_25] : memref<32x32xf32, #tpu.memory_space<vmem>>, vector<32x32xf32>
    %c0_26 = arith.constant 0 : index
    %c0_27 = arith.constant 0 : index
    %c0_28 = arith.constant 0 : index
    %23 = vector.load %arg12[%c0_26, %c0_27, %c0_28] : memref<4x8x32xf32, #tpu.memory_space<vmem>>, vector<4x8x32xf32>
    %cst_29 = arith.constant dense<0.000000e+00> : vector<16xf32>
    %24 = vector.multi_reduction <add>, %5, %cst_29 [1] : vector<16x32xf32> to vector<16xf32>
    %25 = vector.shape_cast %24 : vector<16xf32> to vector<16x1xf32>
    %cst_30 = arith.constant 3.200000e+01 : f32
    %26 = vector.broadcast %cst_30 : f32 to vector<16x1xf32>
    %27 = arith.divf %25, %26 : vector<16x1xf32>
    %28 = vector.broadcast %27 : vector<16x1xf32> to vector<16x32xf32>
    %29 = arith.subf %5, %28 : vector<16x32xf32>
    %30 = arith.mulf %29, %29 : vector<16x32xf32>
    %cst_31 = arith.constant dense<0.000000e+00> : vector<16xf32>
    %31 = vector.multi_reduction <add>, %30, %cst_31 [1] : vector<16x32xf32> to vector<16xf32>
    %32 = vector.shape_cast %31 : vector<16xf32> to vector<16x1xf32>
    %cst_32 = arith.constant 3.200000e+01 : f32
    %33 = vector.broadcast %cst_32 : f32 to vector<16x1xf32>
    %34 = arith.divf %32, %33 : vector<16x1xf32>
    %35 = vector.broadcast %27 : vector<16x1xf32> to vector<16x32xf32>
    %36 = arith.subf %5, %35 : vector<16x32xf32>
    %cst_33 = arith.constant 9.99999974E-6 : f32
    %37 = vector.broadcast %cst_33 : f32 to vector<16x1xf32>
    %38 = arith.addf %34, %37 : vector<16x1xf32>
    %39 = math.rsqrt %38 : vector<16x1xf32>
    %40 = vector.broadcast %39 : vector<16x1xf32> to vector<16x32xf32>
    %41 = arith.mulf %36, %40 : vector<16x32xf32>
    %42 = vector.broadcast %16 : vector<1x32xf32> to vector<16x32xf32>
    %43 = arith.mulf %41, %42 : vector<16x32xf32>
    %44 = vector.broadcast %17 : vector<1x32xf32> to vector<16x32xf32>
    %45 = arith.addf %43, %44 : vector<16x32xf32>
    %cst_34 = arith.constant dense<0.000000e+00> : vector<8xf32>
    %46 = vector.multi_reduction <add>, %7, %cst_34 [1] : vector<8x32xf32> to vector<8xf32>
    %47 = vector.shape_cast %46 : vector<8xf32> to vector<8x1xf32>
    %cst_35 = arith.constant 3.200000e+01 : f32
    %48 = vector.broadcast %cst_35 : f32 to vector<8x1xf32>
    %49 = arith.divf %47, %48 : vector<8x1xf32>
    %50 = vector.broadcast %49 : vector<8x1xf32> to vector<8x32xf32>
    %51 = arith.subf %7, %50 : vector<8x32xf32>
    %52 = arith.mulf %51, %51 : vector<8x32xf32>
    %cst_36 = arith.constant dense<0.000000e+00> : vector<8xf32>
    %53 = vector.multi_reduction <add>, %52, %cst_36 [1] : vector<8x32xf32> to vector<8xf32>
    %54 = vector.shape_cast %53 : vector<8xf32> to vector<8x1xf32>
    %cst_37 = arith.constant 3.200000e+01 : f32
    %55 = vector.broadcast %cst_37 : f32 to vector<8x1xf32>
    %56 = arith.divf %54, %55 : vector<8x1xf32>
    %57 = vector.broadcast %49 : vector<8x1xf32> to vector<8x32xf32>
    %58 = arith.subf %7, %57 : vector<8x32xf32>
    %cst_38 = arith.constant 9.99999974E-6 : f32
    %59 = vector.broadcast %cst_38 : f32 to vector<8x1xf32>
    %60 = arith.addf %56, %59 : vector<8x1xf32>
    %61 = math.rsqrt %60 : vector<8x1xf32>
    %62 = vector.broadcast %61 : vector<8x1xf32> to vector<8x32xf32>
    %63 = arith.mulf %58, %62 : vector<8x32xf32>
    %64 = vector.broadcast %18 : vector<1x32xf32> to vector<8x32xf32>
    %65 = arith.mulf %63, %64 : vector<8x32xf32>
    %66 = vector.broadcast %19 : vector<1x32xf32> to vector<8x32xf32>
    %67 = arith.addf %65, %66 : vector<8x32xf32>
    %cst_39 = arith.constant dense<0.000000e+00> : vector<32x16xf32>
    %68 = tpu.matmul %20, %45, %cst_39 {dimension_numbers = #tpu.dot_dimension_numbers<[1], [1], [0], [0], [0, 0, 1, 0], [], []>} : vector<32x32xf32>, vector<16x32xf32>, vector<32x16xf32> -> vector<32x16xf32>
    %cst_40 = arith.constant dense<0.000000e+00> : vector<32x8xf32>
    %69 = tpu.matmul %21, %67, %cst_40 {dimension_numbers = #tpu.dot_dimension_numbers<[1], [1], [0], [0], [0, 0, 1, 0], [], []>} : vector<32x32xf32>, vector<8x32xf32>, vector<32x8xf32> -> vector<32x8xf32>
    %cst_41 = arith.constant dense<0.000000e+00> : vector<32x8xf32>
    %70 = tpu.matmul %22, %67, %cst_41 {dimension_numbers = #tpu.dot_dimension_numbers<[1], [1], [0], [0], [0, 0, 1, 0], [], []>} : vector<32x32xf32>, vector<8x32xf32>, vector<32x8xf32> -> vector<32x8xf32>
    %71 = vector.shape_cast %68 : vector<32x16xf32> to vector<4x8x16xf32>
    %72 = tpu.transpose %71, [0, 2, 1] : vector<4x8x16xf32> -> vector<4x16x8xf32>
    %73 = vector.shape_cast %69 : vector<32x8xf32> to vector<4x8x8xf32>
    %74 = tpu.transpose %73, [0, 2, 1] : vector<4x8x8xf32> -> vector<4x8x8xf32>
    %75 = vector.shape_cast %70 : vector<32x8xf32> to vector<4x8x8xf32>
    %76 = tpu.transpose %75, [0, 2, 1] : vector<4x8x8xf32> -> vector<4x8x8xf32>
    "tpu.trace_start"() <{level = 10 : i32, message = "hnk,hck->hnc"}> : () -> ()
    %cst_42 = arith.constant dense<0.000000e+00> : vector<4x16x8xf32>
    %77 = tpu.matmul %72, %74, %cst_42 {dimension_numbers = #tpu.dot_dimension_numbers<[2], [2], [1], [1], [0, 0, 0, 1, 1, 1], [0], [0]>} : vector<4x16x8xf32>, vector<4x8x8xf32>, vector<4x16x8xf32> -> vector<4x16x8xf32>
    "tpu.trace_stop"() : () -> ()
    %cst_43 = arith.constant 0.353553385 : f32
    %78 = vector.broadcast %cst_43 : f32 to vector<4x16x8xf32>
    %79 = arith.mulf %77, %78 : vector<4x16x8xf32>
    %80 = vector.shape_cast %11 : vector<16x8xi1> to vector<1x16x8xi1>
    %cst_44 = arith.constant -1.000000e+09 : f32
    %81 = vector.shape_cast %80 : vector<1x16x8xi1> to vector<1x16x8xi1>
    %82 = vector.broadcast %81 : vector<1x16x8xi1> to vector<4x16x8xi1>
    %83 = vector.broadcast %cst_44 : f32 to vector<4x16x8xf32>
    %84 = arith.select %82, %79, %83 : vector<4x16x8xi1>, vector<4x16x8xf32>
    %cst_45 = arith.constant dense<0xFF800000> : vector<4x16xf32>
    %85 = vector.multi_reduction <maximumf>, %84, %cst_45 [2] : vector<4x16x8xf32> to vector<4x16xf32>
    %86 = vector.shape_cast %85 : vector<4x16xf32> to vector<4x16x1xf32>
    %87 = vector.broadcast %86 : vector<4x16x1xf32> to vector<4x16x8xf32>
    %88 = arith.subf %84, %87 : vector<4x16x8xf32>
    %89 = math.exp %88 : vector<4x16x8xf32>
    %cst_46 = arith.constant dense<0.000000e+00> : vector<4x16xf32>
    %90 = vector.multi_reduction <add>, %89, %cst_46 [2] : vector<4x16x8xf32> to vector<4x16xf32>
    %91 = vector.shape_cast %90 : vector<4x16xf32> to vector<4x16x1xf32>
    %92 = tpu.reciprocal %91 {approx = true} : vector<4x16x1xf32> -> vector<4x16x1xf32>
    %93 = vector.broadcast %92 : vector<4x16x1xf32> to vector<4x16x8xf32>
    %94 = arith.mulf %89, %93 : vector<4x16x8xf32>
    "tpu.trace_start"() <{level = 10 : i32, message = "hnc,hck->hnk"}> : () -> ()
    %cst_47 = arith.constant dense<0.000000e+00> : vector<4x16x8xf32>
    %95 = tpu.matmul %94, %76, %cst_47 {dimension_numbers = #tpu.dot_dimension_numbers<[2], [1], [1], [2], [0, 0, 0, 1, 1, 2], [0], [0]>} : vector<4x16x8xf32>, vector<4x8x8xf32>, vector<4x16x8xf32> -> vector<4x16x8xf32>
    "tpu.trace_stop"() : () -> ()
    "tpu.trace_start"() <{level = 10 : i32, message = "hnk,hkd->hnd"}> : () -> ()
    %cst_48 = arith.constant dense<0.000000e+00> : vector<4x16x32xf32>
    %96 = tpu.matmul %95, %23, %cst_48 {dimension_numbers = #tpu.dot_dimension_numbers<[2], [1], [1], [2], [0, 0, 0, 1, 1, 2], [0], [0]>} : vector<4x16x8xf32>, vector<4x8x32xf32>, vector<4x16x32xf32> -> vector<4x16x32xf32>
    "tpu.trace_stop"() : () -> ()
    %cst_49 = arith.constant dense<0.000000e+00> : vector<16x32xf32>
    %97 = vector.multi_reduction <add>, %96, %cst_49 [0] : vector<4x16x32xf32> to vector<16x32xf32>
    %98 = arith.addf %4, %97 : vector<16x32xf32>
    %c0_50 = arith.constant 0 : index
    %c0_51 = arith.constant 0 : index
    %99 = vector.load %arg13[%c0_50, %c0_51] : memref<1x32xf32, #tpu.memory_space<vmem>>, vector<1x32xf32>
    %c0_52 = arith.constant 0 : index
    %c0_53 = arith.constant 0 : index
    %100 = vector.load %arg14[%c0_52, %c0_53] : memref<1x32xf32, #tpu.memory_space<vmem>>, vector<1x32xf32>
    %c0_54 = arith.constant 0 : index
    %c0_55 = arith.constant 0 : index
    %101 = vector.load %arg15[%c0_54, %c0_55] : memref<32x128xf32, #tpu.memory_space<vmem>>, vector<32x128xf32>
    %c0_56 = arith.constant 0 : index
    %c0_57 = arith.constant 0 : index
    %102 = vector.load %arg16[%c0_56, %c0_57] : memref<32x128xf32, #tpu.memory_space<vmem>>, vector<32x128xf32>
    %c0_58 = arith.constant 0 : index
    %c0_59 = arith.constant 0 : index
    %103 = vector.load %arg17[%c0_58, %c0_59] : memref<128x32xf32, #tpu.memory_space<vmem>>, vector<128x32xf32>
    %cst_60 = arith.constant dense<0.000000e+00> : vector<16xf32>
    %104 = vector.multi_reduction <add>, %98, %cst_60 [1] : vector<16x32xf32> to vector<16xf32>
    %105 = vector.shape_cast %104 : vector<16xf32> to vector<16x1xf32>
    %cst_61 = arith.constant 3.200000e+01 : f32
    %106 = vector.broadcast %cst_61 : f32 to vector<16x1xf32>
    %107 = arith.divf %105, %106 : vector<16x1xf32>
    %108 = vector.broadcast %107 : vector<16x1xf32> to vector<16x32xf32>
    %109 = arith.subf %98, %108 : vector<16x32xf32>
    %110 = arith.mulf %109, %109 : vector<16x32xf32>
    %cst_62 = arith.constant dense<0.000000e+00> : vector<16xf32>
    %111 = vector.multi_reduction <add>, %110, %cst_62 [1] : vector<16x32xf32> to vector<16xf32>
    %112 = vector.shape_cast %111 : vector<16xf32> to vector<16x1xf32>
    %cst_63 = arith.constant 3.200000e+01 : f32
    %113 = vector.broadcast %cst_63 : f32 to vector<16x1xf32>
    %114 = arith.divf %112, %113 : vector<16x1xf32>
    %115 = vector.broadcast %107 : vector<16x1xf32> to vector<16x32xf32>
    %116 = arith.subf %98, %115 : vector<16x32xf32>
    %cst_64 = arith.constant 9.99999974E-6 : f32
    %117 = vector.broadcast %cst_64 : f32 to vector<16x1xf32>
    %118 = arith.addf %114, %117 : vector<16x1xf32>
    %119 = math.rsqrt %118 : vector<16x1xf32>
    %120 = vector.broadcast %119 : vector<16x1xf32> to vector<16x32xf32>
    %121 = arith.mulf %116, %120 : vector<16x32xf32>
    %122 = vector.broadcast %99 : vector<1x32xf32> to vector<16x32xf32>
    %123 = arith.mulf %121, %122 : vector<16x32xf32>
    %124 = vector.broadcast %100 : vector<1x32xf32> to vector<16x32xf32>
    %125 = arith.addf %123, %124 : vector<16x32xf32>
    %cst_65 = arith.constant dense<0.000000e+00> : vector<16x128xf32>
    %126 = tpu.matmul %125, %101, %cst_65 {dimension_numbers = #tpu.dot_dimension_numbers<[1], [0], [0], [1], [0, 0, 1, 1], [], []>} : vector<16x32xf32>, vector<32x128xf32>, vector<16x128xf32> -> vector<16x128xf32>
    %cst_66 = arith.constant dense<0.000000e+00> : vector<16x128xf32>
    %127 = tpu.matmul %125, %102, %cst_66 {dimension_numbers = #tpu.dot_dimension_numbers<[1], [0], [0], [1], [0, 0, 1, 1], [], []>} : vector<16x32xf32>, vector<32x128xf32>, vector<16x128xf32> -> vector<16x128xf32>
    %cst_67 = arith.constant 5.000000e-01 : f32
    %128 = vector.broadcast %cst_67 : f32 to vector<16x128xf32>
    %129 = arith.mulf %128, %127 : vector<16x128xf32>
    %cst_68 = arith.constant 4.471500e-02 : f32
    %130 = vector.broadcast %cst_68 : f32 to vector<16x128xf32>
    %131 = arith.mulf %130, %127 : vector<16x128xf32>
    %132 = arith.mulf %131, %127 : vector<16x128xf32>
    %133 = arith.mulf %132, %127 : vector<16x128xf32>
    %134 = arith.addf %127, %133 : vector<16x128xf32>
    %cst_69 = arith.constant 0.797884583 : f32
    %135 = vector.broadcast %cst_69 : f32 to vector<16x128xf32>
    %136 = arith.mulf %135, %134 : vector<16x128xf32>
    %137 = math.tanh %136 : vector<16x128xf32>
    %cst_70 = arith.constant 1.000000e+00 : f32
    %138 = vector.broadcast %cst_70 : f32 to vector<16x128xf32>
    %139 = arith.addf %138, %137 : vector<16x128xf32>
    %140 = arith.mulf %129, %139 : vector<16x128xf32>
    %141 = arith.mulf %126, %140 : vector<16x128xf32>
    %cst_71 = arith.constant dense<0.000000e+00> : vector<16x32xf32>
    %142 = tpu.matmul %141, %103, %cst_71 {dimension_numbers = #tpu.dot_dimension_numbers<[1], [0], [0], [1], [0, 0, 1, 1], [], []>} : vector<16x128xf32>, vector<128x32xf32>, vector<16x32xf32> -> vector<16x32xf32>
    %143 = arith.addf %5, %142 : vector<16x32xf32>
    %c0_72 = arith.constant 0 : index
    %c0_73 = arith.constant 0 : index
    %144 = vector.load %arg18[%c0_72, %c0_73] : memref<1x32xf32, #tpu.memory_space<vmem>>, vector<1x32xf32>
    %c0_74 = arith.constant 0 : index
    %c0_75 = arith.constant 0 : index
    %145 = vector.load %arg19[%c0_74, %c0_75] : memref<1x32xf32, #tpu.memory_space<vmem>>, vector<1x32xf32>
    %c0_76 = arith.constant 0 : index
    %c0_77 = arith.constant 0 : index
    %146 = vector.load %arg20[%c0_76, %c0_77] : memref<1x32xf32, #tpu.memory_space<vmem>>, vector<1x32xf32>
    %c0_78 = arith.constant 0 : index
    %c0_79 = arith.constant 0 : index
    %147 = vector.load %arg21[%c0_78, %c0_79] : memref<1x32xf32, #tpu.memory_space<vmem>>, vector<1x32xf32>
    %c0_80 = arith.constant 0 : index
    %c0_81 = arith.constant 0 : index
    %148 = vector.load %arg22[%c0_80, %c0_81] : memref<32x32xf32, #tpu.memory_space<vmem>>, vector<32x32xf32>
    %c0_82 = arith.constant 0 : index
    %c0_83 = arith.constant 0 : index
    %149 = vector.load %arg23[%c0_82, %c0_83] : memref<32x32xf32, #tpu.memory_space<vmem>>, vector<32x32xf32>
    %c0_84 = arith.constant 0 : index
    %c0_85 = arith.constant 0 : index
    %150 = vector.load %arg24[%c0_84, %c0_85] : memref<32x32xf32, #tpu.memory_space<vmem>>, vector<32x32xf32>
    %c0_86 = arith.constant 0 : index
    %c0_87 = arith.constant 0 : index
    %c0_88 = arith.constant 0 : index
    %151 = vector.load %arg25[%c0_86, %c0_87, %c0_88] : memref<4x8x32xf32, #tpu.memory_space<vmem>>, vector<4x8x32xf32>
    %cst_89 = arith.constant dense<0.000000e+00> : vector<8xf32>
    %152 = vector.multi_reduction <add>, %7, %cst_89 [1] : vector<8x32xf32> to vector<8xf32>
    %153 = vector.shape_cast %152 : vector<8xf32> to vector<8x1xf32>
    %cst_90 = arith.constant 3.200000e+01 : f32
    %154 = vector.broadcast %cst_90 : f32 to vector<8x1xf32>
    %155 = arith.divf %153, %154 : vector<8x1xf32>
    %156 = vector.broadcast %155 : vector<8x1xf32> to vector<8x32xf32>
    %157 = arith.subf %7, %156 : vector<8x32xf32>
    %158 = arith.mulf %157, %157 : vector<8x32xf32>
    %cst_91 = arith.constant dense<0.000000e+00> : vector<8xf32>
    %159 = vector.multi_reduction <add>, %158, %cst_91 [1] : vector<8x32xf32> to vector<8xf32>
    %160 = vector.shape_cast %159 : vector<8xf32> to vector<8x1xf32>
    %cst_92 = arith.constant 3.200000e+01 : f32
    %161 = vector.broadcast %cst_92 : f32 to vector<8x1xf32>
    %162 = arith.divf %160, %161 : vector<8x1xf32>
    %163 = vector.broadcast %155 : vector<8x1xf32> to vector<8x32xf32>
    %164 = arith.subf %7, %163 : vector<8x32xf32>
    %cst_93 = arith.constant 9.99999974E-6 : f32
    %165 = vector.broadcast %cst_93 : f32 to vector<8x1xf32>
    %166 = arith.addf %162, %165 : vector<8x1xf32>
    %167 = math.rsqrt %166 : vector<8x1xf32>
    %168 = vector.broadcast %167 : vector<8x1xf32> to vector<8x32xf32>
    %169 = arith.mulf %164, %168 : vector<8x32xf32>
    %170 = vector.broadcast %144 : vector<1x32xf32> to vector<8x32xf32>
    %171 = arith.mulf %169, %170 : vector<8x32xf32>
    %172 = vector.broadcast %145 : vector<1x32xf32> to vector<8x32xf32>
    %173 = arith.addf %171, %172 : vector<8x32xf32>
    %cst_94 = arith.constant dense<0.000000e+00> : vector<16xf32>
    %174 = vector.multi_reduction <add>, %143, %cst_94 [1] : vector<16x32xf32> to vector<16xf32>
    %175 = vector.shape_cast %174 : vector<16xf32> to vector<16x1xf32>
    %cst_95 = arith.constant 3.200000e+01 : f32
    %176 = vector.broadcast %cst_95 : f32 to vector<16x1xf32>
    %177 = arith.divf %175, %176 : vector<16x1xf32>
    %178 = vector.broadcast %177 : vector<16x1xf32> to vector<16x32xf32>
    %179 = arith.subf %143, %178 : vector<16x32xf32>
    %180 = arith.mulf %179, %179 : vector<16x32xf32>
    %cst_96 = arith.constant dense<0.000000e+00> : vector<16xf32>
    %181 = vector.multi_reduction <add>, %180, %cst_96 [1] : vector<16x32xf32> to vector<16xf32>
    %182 = vector.shape_cast %181 : vector<16xf32> to vector<16x1xf32>
    %cst_97 = arith.constant 3.200000e+01 : f32
    %183 = vector.broadcast %cst_97 : f32 to vector<16x1xf32>
    %184 = arith.divf %182, %183 : vector<16x1xf32>
    %185 = vector.broadcast %177 : vector<16x1xf32> to vector<16x32xf32>
    %186 = arith.subf %143, %185 : vector<16x32xf32>
    %cst_98 = arith.constant 9.99999974E-6 : f32
    %187 = vector.broadcast %cst_98 : f32 to vector<16x1xf32>
    %188 = arith.addf %184, %187 : vector<16x1xf32>
    %189 = math.rsqrt %188 : vector<16x1xf32>
    %190 = vector.broadcast %189 : vector<16x1xf32> to vector<16x32xf32>
    %191 = arith.mulf %186, %190 : vector<16x32xf32>
    %192 = vector.broadcast %146 : vector<1x32xf32> to vector<16x32xf32>
    %193 = arith.mulf %191, %192 : vector<16x32xf32>
    %194 = vector.broadcast %147 : vector<1x32xf32> to vector<16x32xf32>
    %195 = arith.addf %193, %194 : vector<16x32xf32>
    %cst_99 = arith.constant dense<0.000000e+00> : vector<32x8xf32>
    %196 = tpu.matmul %148, %173, %cst_99 {dimension_numbers = #tpu.dot_dimension_numbers<[1], [1], [0], [0], [0, 0, 1, 0], [], []>} : vector<32x32xf32>, vector<8x32xf32>, vector<32x8xf32> -> vector<32x8xf32>
    %cst_100 = arith.constant dense<0.000000e+00> : vector<32x16xf32>
    %197 = tpu.matmul %149, %195, %cst_100 {dimension_numbers = #tpu.dot_dimension_numbers<[1], [1], [0], [0], [0, 0, 1, 0], [], []>} : vector<32x32xf32>, vector<16x32xf32>, vector<32x16xf32> -> vector<32x16xf32>
    %cst_101 = arith.constant dense<0.000000e+00> : vector<32x16xf32>
    %198 = tpu.matmul %150, %195, %cst_101 {dimension_numbers = #tpu.dot_dimension_numbers<[1], [1], [0], [0], [0, 0, 1, 0], [], []>} : vector<32x32xf32>, vector<16x32xf32>, vector<32x16xf32> -> vector<32x16xf32>
    %199 = vector.shape_cast %196 : vector<32x8xf32> to vector<4x8x8xf32>
    %200 = tpu.transpose %199, [0, 2, 1] : vector<4x8x8xf32> -> vector<4x8x8xf32>
    %201 = vector.shape_cast %197 : vector<32x16xf32> to vector<4x8x16xf32>
    %202 = tpu.transpose %201, [0, 2, 1] : vector<4x8x16xf32> -> vector<4x16x8xf32>
    %203 = vector.shape_cast %198 : vector<32x16xf32> to vector<4x8x16xf32>
    %204 = tpu.transpose %203, [0, 2, 1] : vector<4x8x16xf32> -> vector<4x16x8xf32>
    "tpu.trace_start"() <{level = 10 : i32, message = "hnk,hck->hnc"}> : () -> ()
    %cst_102 = arith.constant dense<0.000000e+00> : vector<4x8x16xf32>
    %205 = tpu.matmul %200, %202, %cst_102 {dimension_numbers = #tpu.dot_dimension_numbers<[2], [2], [1], [1], [0, 0, 0, 1, 1, 1], [0], [0]>} : vector<4x8x8xf32>, vector<4x16x8xf32>, vector<4x8x16xf32> -> vector<4x8x16xf32>
    "tpu.trace_stop"() : () -> ()
    %cst_103 = arith.constant 0.353553385 : f32
    %206 = vector.broadcast %cst_103 : f32 to vector<4x8x16xf32>
    %207 = arith.mulf %205, %206 : vector<4x8x16xf32>
    %208 = vector.shape_cast %15 : vector<8x16xi1> to vector<1x8x16xi1>
    %cst_104 = arith.constant -1.000000e+09 : f32
    %209 = vector.shape_cast %208 : vector<1x8x16xi1> to vector<1x8x16xi1>
    %210 = vector.broadcast %209 : vector<1x8x16xi1> to vector<4x8x16xi1>
    %211 = vector.broadcast %cst_104 : f32 to vector<4x8x16xf32>
    %212 = arith.select %210, %207, %211 : vector<4x8x16xi1>, vector<4x8x16xf32>
    %cst_105 = arith.constant dense<0xFF800000> : vector<4x8xf32>
    %213 = vector.multi_reduction <maximumf>, %212, %cst_105 [2] : vector<4x8x16xf32> to vector<4x8xf32>
    %214 = vector.shape_cast %213 : vector<4x8xf32> to vector<4x8x1xf32>
    %215 = vector.broadcast %214 : vector<4x8x1xf32> to vector<4x8x16xf32>
    %216 = arith.subf %212, %215 : vector<4x8x16xf32>
    %217 = math.exp %216 : vector<4x8x16xf32>
    %cst_106 = arith.constant dense<0.000000e+00> : vector<4x8xf32>
    %218 = vector.multi_reduction <add>, %217, %cst_106 [2] : vector<4x8x16xf32> to vector<4x8xf32>
    %219 = vector.shape_cast %218 : vector<4x8xf32> to vector<4x8x1xf32>
    %220 = tpu.reciprocal %219 {approx = true} : vector<4x8x1xf32> -> vector<4x8x1xf32>
    %221 = vector.broadcast %220 : vector<4x8x1xf32> to vector<4x8x16xf32>
    %222 = arith.mulf %217, %221 : vector<4x8x16xf32>
    "tpu.trace_start"() <{level = 10 : i32, message = "hnc,hck->hnk"}> : () -> ()
    %cst_107 = arith.constant dense<0.000000e+00> : vector<4x8x8xf32>
    %223 = tpu.matmul %222, %204, %cst_107 {dimension_numbers = #tpu.dot_dimension_numbers<[2], [1], [1], [2], [0, 0, 0, 1, 1, 2], [0], [0]>} : vector<4x8x16xf32>, vector<4x16x8xf32>, vector<4x8x8xf32> -> vector<4x8x8xf32>
    "tpu.trace_stop"() : () -> ()
    "tpu.trace_start"() <{level = 10 : i32, message = "hnk,hkd->hnd"}> : () -> ()
    %cst_108 = arith.constant dense<0.000000e+00> : vector<4x8x32xf32>
    %224 = tpu.matmul %223, %151, %cst_108 {dimension_numbers = #tpu.dot_dimension_numbers<[2], [1], [1], [2], [0, 0, 0, 1, 1, 2], [0], [0]>} : vector<4x8x8xf32>, vector<4x8x32xf32>, vector<4x8x32xf32> -> vector<4x8x32xf32>
    "tpu.trace_stop"() : () -> ()
    %cst_109 = arith.constant dense<0.000000e+00> : vector<8x32xf32>
    %225 = vector.multi_reduction <add>, %224, %cst_109 [0] : vector<4x8x32xf32> to vector<8x32xf32>
    %226 = arith.addf %6, %225 : vector<8x32xf32>
    %c0_110 = arith.constant 0 : index
    %c0_111 = arith.constant 0 : index
    %227 = vector.load %arg26[%c0_110, %c0_111] : memref<1x32xf32, #tpu.memory_space<vmem>>, vector<1x32xf32>
    %c0_112 = arith.constant 0 : index
    %c0_113 = arith.constant 0 : index
    %228 = vector.load %arg27[%c0_112, %c0_113] : memref<1x32xf32, #tpu.memory_space<vmem>>, vector<1x32xf32>
    %c0_114 = arith.constant 0 : index
    %c0_115 = arith.constant 0 : index
    %229 = vector.load %arg28[%c0_114, %c0_115] : memref<32x128xf32, #tpu.memory_space<vmem>>, vector<32x128xf32>
    %c0_116 = arith.constant 0 : index
    %c0_117 = arith.constant 0 : index
    %230 = vector.load %arg29[%c0_116, %c0_117] : memref<32x128xf32, #tpu.memory_space<vmem>>, vector<32x128xf32>
    %c0_118 = arith.constant 0 : index
    %c0_119 = arith.constant 0 : index
    %231 = vector.load %arg30[%c0_118, %c0_119] : memref<128x32xf32, #tpu.memory_space<vmem>>, vector<128x32xf32>
    %cst_120 = arith.constant dense<0.000000e+00> : vector<8xf32>
    %232 = vector.multi_reduction <add>, %226, %cst_120 [1] : vector<8x32xf32> to vector<8xf32>
    %233 = vector.shape_cast %232 : vector<8xf32> to vector<8x1xf32>
    %cst_121 = arith.constant 3.200000e+01 : f32
    %234 = vector.broadcast %cst_121 : f32 to vector<8x1xf32>
    %235 = arith.divf %233, %234 : vector<8x1xf32>
    %236 = vector.broadcast %235 : vector<8x1xf32> to vector<8x32xf32>
    %237 = arith.subf %226, %236 : vector<8x32xf32>
    %238 = arith.mulf %237, %237 : vector<8x32xf32>
    %cst_122 = arith.constant dense<0.000000e+00> : vector<8xf32>
    %239 = vector.multi_reduction <add>, %238, %cst_122 [1] : vector<8x32xf32> to vector<8xf32>
    %240 = vector.shape_cast %239 : vector<8xf32> to vector<8x1xf32>
    %cst_123 = arith.constant 3.200000e+01 : f32
    %241 = vector.broadcast %cst_123 : f32 to vector<8x1xf32>
    %242 = arith.divf %240, %241 : vector<8x1xf32>
    %243 = vector.broadcast %235 : vector<8x1xf32> to vector<8x32xf32>
    %244 = arith.subf %226, %243 : vector<8x32xf32>
    %cst_124 = arith.constant 9.99999974E-6 : f32
    %245 = vector.broadcast %cst_124 : f32 to vector<8x1xf32>
    %246 = arith.addf %242, %245 : vector<8x1xf32>
    %247 = math.rsqrt %246 : vector<8x1xf32>
    %248 = vector.broadcast %247 : vector<8x1xf32> to vector<8x32xf32>
    %249 = arith.mulf %244, %248 : vector<8x32xf32>
    %250 = vector.broadcast %227 : vector<1x32xf32> to vector<8x32xf32>
    %251 = arith.mulf %249, %250 : vector<8x32xf32>
    %252 = vector.broadcast %228 : vector<1x32xf32> to vector<8x32xf32>
    %253 = arith.addf %251, %252 : vector<8x32xf32>
    %cst_125 = arith.constant dense<0.000000e+00> : vector<8x128xf32>
    %254 = tpu.matmul %253, %229, %cst_125 {dimension_numbers = #tpu.dot_dimension_numbers<[1], [0], [0], [1], [0, 0, 1, 1], [], []>} : vector<8x32xf32>, vector<32x128xf32>, vector<8x128xf32> -> vector<8x128xf32>
    %cst_126 = arith.constant dense<0.000000e+00> : vector<8x128xf32>
    %255 = tpu.matmul %253, %230, %cst_126 {dimension_numbers = #tpu.dot_dimension_numbers<[1], [0], [0], [1], [0, 0, 1, 1], [], []>} : vector<8x32xf32>, vector<32x128xf32>, vector<8x128xf32> -> vector<8x128xf32>
    %cst_127 = arith.constant 5.000000e-01 : f32
    %256 = vector.broadcast %cst_127 : f32 to vector<8x128xf32>
    %257 = arith.mulf %256, %255 : vector<8x128xf32>
    %cst_128 = arith.constant 4.471500e-02 : f32
    %258 = vector.broadcast %cst_128 : f32 to vector<8x128xf32>
    %259 = arith.mulf %258, %255 : vector<8x128xf32>
    %260 = arith.mulf %259, %255 : vector<8x128xf32>
    %261 = arith.mulf %260, %255 : vector<8x128xf32>
    %262 = arith.addf %255, %261 : vector<8x128xf32>
    %cst_129 = arith.constant 0.797884583 : f32
    %263 = vector.broadcast %cst_129 : f32 to vector<8x128xf32>
    %264 = arith.mulf %263, %262 : vector<8x128xf32>
    %265 = math.tanh %264 : vector<8x128xf32>
    %cst_130 = arith.constant 1.000000e+00 : f32
    %266 = vector.broadcast %cst_130 : f32 to vector<8x128xf32>
    %267 = arith.addf %266, %265 : vector<8x128xf32>
    %268 = arith.mulf %257, %267 : vector<8x128xf32>
    %269 = arith.mulf %254, %268 : vector<8x128xf32>
    %cst_131 = arith.constant dense<0.000000e+00> : vector<8x32xf32>
    %270 = tpu.matmul %269, %231, %cst_131 {dimension_numbers = #tpu.dot_dimension_numbers<[1], [0], [0], [1], [0, 0, 1, 1], [], []>} : vector<8x128xf32>, vector<128x32xf32>, vector<8x32xf32> -> vector<8x32xf32>
    %271 = arith.addf %7, %270 : vector<8x32xf32>
    %272 = tpu.concatenate %98, %143 in 1 : vector<16x32xf32>, vector<16x32xf32> -> vector<16x64xf32>
    %c0_132 = arith.constant 0 : index
    %c0_133 = arith.constant 0 : index
    %c0_134 = arith.constant 0 : index
    %273 = vector.load %arg31[%c0_132, %c0_133, %c0_134] : memref<1x16x64xf32, #tpu.memory_space<vmem>>, vector<1x16x64xf32>
    %274 = vector.shape_cast %273 : vector<1x16x64xf32> to vector<16x64xf32>
    %275 = vector.shape_cast %272 : vector<16x64xf32> to vector<1x16x64xf32>
    tpu.vector_store %arg31[%c0_132, %c0_133, %c0_134], %275 {strides = array<i32>} : memref<1x16x64xf32, #tpu.memory_space<vmem>>, vector<1x16x64xf32>,
    %276 = tpu.concatenate %226, %271 in 1 : vector<8x32xf32>, vector<8x32xf32> -> vector<8x64xf32>
    %c0_135 = arith.constant 0 : index
    %c0_136 = arith.constant 0 : index
    %c0_137 = arith.constant 0 : index
    %277 = vector.load %arg32[%c0_135, %c0_136, %c0_137] : memref<1x8x64xf32, #tpu.memory_space<vmem>>, vector<1x8x64xf32>
    %278 = vector.shape_cast %277 : vector<1x8x64xf32> to vector<8x64xf32>
    %279 = vector.shape_cast %276 : vector<8x64xf32> to vector<1x8x64xf32>
    tpu.vector_store %arg32[%c0_135, %c0_136, %c0_137], %279 {strides = array<i32>} : memref<1x8x64xf32, #tpu.memory_space<vmem>>, vector<1x8x64xf32>,
    return
  }
  func.func @transform_0(%arg0: i32) -> (i32, i32, i32) {
    %c0_i32 = arith.constant 0 : i32
    %c0_i32_0 = arith.constant 0 : i32
    %c0_i32_1 = arith.constant 0 : i32
    return %arg0, %c0_i32, %c0_i32_0 : i32, i32, i32
  }
  func.func @transform_1(%arg0: i32) -> (i32, i32, i32) {
    %c0_i32 = arith.constant 0 : i32
    %c0_i32_0 = arith.constant 0 : i32
    %c0_i32_1 = arith.constant 0 : i32
    return %arg0, %c0_i32, %c0_i32_0 : i32, i32, i32
  }
  func.func @transform_2(%arg0: i32) -> (i32, i32, i32) {
    %c0_i32 = arith.constant 0 : i32
    %c0_i32_0 = arith.constant 0 : i32
    %c0_i32_1 = arith.constant 0 : i32
    return %arg0, %c0_i32, %c0_i32_0 : i32, i32, i32
  }
  func.func @transform_3(%arg0: i32) -> (i32, i32, i32) {
    %c0_i32 = arith.constant 0 : i32
    %c0_i32_0 = arith.constant 0 : i32
    %c0_i32_1 = arith.constant 0 : i32
    return %arg0, %c0_i32, %c0_i32_0 : i32, i32, i32
  }
  func.func @transform_4(%arg0: i32) -> (i32, i32) {
    %c0_i32 = arith.constant 0 : i32
    %c0_i32_0 = arith.constant 0 : i32
    %c0_i32_1 = arith.constant 0 : i32
    return %c0_i32, %c0_i32_0 : i32, i32
  }
  func.func @transform_5(%arg0: i32) -> (i32, i32) {
    %c0_i32 = arith.constant 0 : i32
    %c0_i32_0 = arith.constant 0 : i32
    %c0_i32_1 = arith.constant 0 : i32
    return %c0_i32, %c0_i32_0 : i32, i32
  }
  func.func @transform_6(%arg0: i32) -> (i32, i32) {
    %c0_i32 = arith.constant 0 : i32
    %c0_i32_0 = arith.constant 0 : i32
    %c0_i32_1 = arith.constant 0 : i32
    return %c0_i32, %c0_i32_0 : i32, i32
  }
  func.func @transform_7(%arg0: i32) -> (i32, i32) {
    %c0_i32 = arith.constant 0 : i32
    %c0_i32_0 = arith.constant 0 : i32
    %c0_i32_1 = arith.constant 0 : i32
    return %c0_i32, %c0_i32_0 : i32, i32
  }
  func.func @transform_8(%arg0: i32) -> (i32, i32) {
    %c0_i32 = arith.constant 0 : i32
    %c0_i32_0 = arith.constant 0 : i32
    %c0_i32_1 = arith.constant 0 : i32
    return %c0_i32, %c0_i32_0 : i32, i32
  }
  func.func @transform_9(%arg0: i32) -> (i32, i32) {
    %c0_i32 = arith.constant 0 : i32
    %c0_i32_0 = arith.constant 0 : i32
    %c0_i32_1 = arith.constant 0 : i32
    return %c0_i32, %c0_i32_0 : i32, i32
  }
  func.func @transform_10(%arg0: i32) -> (i32, i32) {
    %c0_i32 = arith.constant 0 : i32
    %c0_i32_0 = arith.constant 0 : i32
    %c0_i32_1 = arith.constant 0 : i32
    return %c0_i32, %c0_i32_0 : i32, i32
  }
  func.func @transform_11(%arg0: i32) -> (i32, i32, i32) {
    %c0_i32 = arith.constant 0 : i32
    %c0_i32_0 = arith.constant 0 : i32
    %c0_i32_1 = arith.constant 0 : i32
    %c0_i32_2 = arith.constant 0 : i32
    return %c0_i32, %c0_i32_0, %c0_i32_1 : i32, i32, i32
  }
  func.func @transform_12(%arg0: i32) -> (i32, i32) {
    %c0_i32 = arith.constant 0 : i32
    %c0_i32_0 = arith.constant 0 : i32
    %c0_i32_1 = arith.constant 0 : i32
    return %c0_i32, %c0_i32_0 : i32, i32
  }
  func.func @transform_13(%arg0: i32) -> (i32, i32) {
    %c0_i32 = arith.constant 0 : i32
    %c0_i32_0 = arith.constant 0 : i32
    %c0_i32_1 = arith.constant 0 : i32
    return %c0_i32, %c0_i32_0 : i32, i32
  }
  func.func @transform_14(%arg0: i32) -> (i32, i32) {
    %c0_i32 = arith.constant 0 : i32
    %c0_i32_0 = arith.constant 0 : i32
    %c0_i32_1 = arith.constant 0 : i32
    return %c0_i32, %c0_i32_0 : i32, i32
  }
  func.func @transform_15(%arg0: i32) -> (i32, i32) {
    %c0_i32 = arith.constant 0 : i32
    %c0_i32_0 = arith.constant 0 : i32
    %c0_i32_1 = arith.constant 0 : i32
    return %c0_i32, %c0_i32_0 : i32, i32
  }
  func.func @transform_16(%arg0: i32) -> (i32, i32) {
    %c0_i32 = arith.constant 0 : i32
    %c0_i32_0 = arith.constant 0 : i32
    %c0_i32_1 = arith.constant 0 : i32
    return %c0_i32, %c0_i32_0 : i32, i32
  }
  func.func @transform_17(%arg0: i32) -> (i32, i32) {
    %c0_i32 = arith.constant 0 : i32
    %c0_i32_0 = arith.constant 0 : i32
    %c0_i32_1 = arith.constant 0 : i32
    return %c0_i32, %c0_i32_0 : i32, i32
  }
  func.func @transform_18(%arg0: i32) -> (i32, i32) {
    %c0_i32 = arith.constant 0 : i32
    %c0_i32_0 = arith.constant 0 : i32
    %c0_i32_1 = arith.constant 0 : i32
    return %c0_i32, %c0_i32_0 : i32, i32
  }
  func.func @transform_19(%arg0: i32) -> (i32, i32) {
    %c0_i32 = arith.constant 0 : i32
    %c0_i32_0 = arith.constant 0 : i32
    %c0_i32_1 = arith.constant 0 : i32
    return %c0_i32, %c0_i32_0 : i32, i32
  }
  func.func @transform_20(%arg0: i32) -> (i32, i32) {
    %c0_i32 = arith.constant 0 : i32
    %c0_i32_0 = arith.constant 0 : i32
    %c0_i32_1 = arith.constant 0 : i32
    return %c0_i32, %c0_i32_0 : i32, i32
  }
  func.func @transform_21(%arg0: i32) -> (i32, i32) {
    %c0_i32 = arith.constant 0 : i32
    %c0_i32_0 = arith.constant 0 : i32
    %c0_i32_1 = arith.constant 0 : i32
    return %c0_i32, %c0_i32_0 : i32, i32
  }
  func.func @transform_22(%arg0: i32) -> (i32, i32) {
    %c0_i32 = arith.constant 0 : i32
    %c0_i32_0 = arith.constant 0 : i32
    %c0_i32_1 = arith.constant 0 : i32
    return %c0_i32, %c0_i32_0 : i32, i32
  }
  func.func @transform_23(%arg0: i32) -> (i32, i32) {
    %c0_i32 = arith.constant 0 : i32
    %c0_i32_0 = arith.constant 0 : i32
    %c0_i32_1 = arith.constant 0 : i32
    return %c0_i32, %c0_i32_0 : i32, i32
  }
  func.func @transform_24(%arg0: i32) -> (i32, i32, i32) {
    %c0_i32 = arith.constant 0 : i32
    %c0_i32_0 = arith.constant 0 : i32
    %c0_i32_1 = arith.constant 0 : i32
    %c0_i32_2 = arith.constant 0 : i32
    return %c0_i32, %c0_i32_0, %c0_i32_1 : i32, i32, i32
  }
  func.func @transform_25(%arg0: i32) -> (i32, i32) {
    %c0_i32 = arith.constant 0 : i32
    %c0_i32_0 = arith.constant 0 : i32
    %c0_i32_1 = arith.constant 0 : i32
    return %c0_i32, %c0_i32_0 : i32, i32
  }
  func.func @transform_26(%arg0: i32) -> (i32, i32) {
    %c0_i32 = arith.constant 0 : i32
    %c0_i32_0 = arith.constant 0 : i32
    %c0_i32_1 = arith.constant 0 : i32
    return %c0_i32, %c0_i32_0 : i32, i32
  }
  func.func @transform_27(%arg0: i32) -> (i32, i32) {
    %c0_i32 = arith.constant 0 : i32
    %c0_i32_0 = arith.constant 0 : i32
    %c0_i32_1 = arith.constant 0 : i32
    return %c0_i32, %c0_i32_0 : i32, i32
  }
  func.func @transform_28(%arg0: i32) -> (i32, i32) {
    %c0_i32 = arith.constant 0 : i32
    %c0_i32_0 = arith.constant 0 : i32
    %c0_i32_1 = arith.constant 0 : i32
    return %c0_i32, %c0_i32_0 : i32, i32
  }
  func.func @transform_29(%arg0: i32) -> (i32, i32) {
    %c0_i32 = arith.constant 0 : i32
    %c0_i32_0 = arith.constant 0 : i32
    %c0_i32_1 = arith.constant 0 : i32
    return %c0_i32, %c0_i32_0 : i32, i32
  }
  func.func @transform_30(%arg0: i32) -> (i32, i32, i32) {
    %c0_i32 = arith.constant 0 : i32
    %c0_i32_0 = arith.constant 0 : i32
    %c0_i32_1 = arith.constant 0 : i32
    return %arg0, %c0_i32, %c0_i32_0 : i32, i32, i32
  }
  func.func @transform_31(%arg0: i32) -> (i32, i32, i32) {
    %c0_i32 = arith.constant 0 : i32
    %c0_i32_0 = arith.constant 0 : i32
    %c0_i32_1 = arith.constant 0 : i32
    return %arg0, %c0_i32, %c0_i32_0 : i32, i32, i32
  }
}

</mosaic_0001>

<bundles_post_ra>
// kernel: reversible_cross_modality_attn_block.1
= control target key start
LH: loop header
LB: loop body
LE: loop exit
PB: predicated region body
PF: predicated region fallthrough
CT: control target
= control target key end

     0   :  { %s5908_s6 = smov 1   ;;  %s5909_s10 = smov 2   ;;  %s6652_s0 = inlined_call_operand.smem [shape: u32[32], index: -1, kind: input, shape index: {}] }
   0x1   :  { %s5956_s5 = sld [smem:[%s6652_s0]]   ;;  %s5910_s14 = smov 3  }
   0x2   :  { %s5961_s9 = sld [smem:[%s6652_s0 + %s5908_s6]]   ;;  %s5911_s18 = smov 4  }
   0x3   :  { %s5966_s13 = sld [smem:[%s6652_s0 + %s5909_s10]]   ;;  %s5912_s22 = smov 5  }
   0x4   :  { %s5971_s17 = sld [smem:[%s6652_s0 + %s5910_s14]]   ;;  %s5913_s26 = smov 6  }
   0x5   :  { %s5976_s21 = sld [smem:[%s6652_s0 + %s5911_s18]]   ;;  %s5914_s30 = smov 7  }
   0x6   :  { %s5981_s25 = sld [smem:[%s6652_s0 + %s5912_s22]]   ;;  %s5915_s4 = smov 8  }
   0x7   :  { %6671 = sst [smem:[#allocation8_spill]] %s5956_s5  ;;  %s5916_s10 = smov 9  }
   0x8   :  { %6672 = sst [smem:[#allocation9_spill]] %s5961_s9  ;;  %s5917_s15 = smov 10  }
   0x9   :  { %6673 = sst [smem:[#allocation10_spill]] %s5966_s13  ;;  %s5918_s20 = smov 11  }
   0xa   :  { %6674 = sst [smem:[#allocation11_spill]] %s5971_s17  ;;  %s5920_s1 = smov 13  }
   0xb   :  { %s5986_s29 = sld [smem:[%s6652_s0 + %s5913_s26]]   ;;  %s5919_s26 = smov 12  }
   0xc   :  { %s5991_s3 = sld [smem:[%s6652_s0 + %s5914_s30]]   ;;  %s5921_s7 = smov 14  }
   0xd   :  { %s5996_s8 = sld [smem:[%s6652_s0 + %s5915_s4]]   ;;  %s5923_s22 = smov 16  }
   0xe   :  { %s6001_s14 = sld [smem:[%s6652_s0 + %s5916_s10]]   ;;  %s5924_s28 = smov 17  }
   0xf   :  { %s6006_s19 = sld [smem:[%s6652_s0 + %s5917_s15]]   ;;  %s5922_s15 = smov 15  }
  0x10   :  { %s6011_s24 = sld [smem:[%s6652_s0 + %s5918_s20]]  }
  0x11   :  { %s6016_s30 = sld [smem:[%s6652_s0 + %s5919_s26]]  }
  0x12   :  { %6675 = sst [smem:[#allocation12_spill]] %s5991_s3 }
  0x13   :  { %6676 = sst [smem:[#allocation13_spill]] %s5996_s8 }
  0x14   :  { %s6021_s6 = sld [smem:[%s6652_s0 + %s5920_s1]]  }
  0x15   :  { %s6026_s12 = sld [smem:[%s6652_s0 + %s5921_s7]]   ;;  %s5925_s7 = smov 18  }
  0x16   :  { %s6031_s20 = sld [smem:[%s6652_s0 + %s5922_s15]]   ;;  %s5926_s15 = smov 19  }
  0x17   :  { %6677 = sst [smem:[#allocation14_spill]] %s6016_s30 }
  0x18   :  { %s6036_s27 = sld [smem:[%s6652_s0 + %s5923_s22]]   ;;  %s5927_s22 = smov 20  }
  0x19   :  { %s6041_s4 = sld [smem:[%s6652_s0 + %s5924_s28]]   ;;  %s5928_s28 = smov 21  }
  0x1a   :  { %6678 = sst [smem:[#allocation15_spill]] %s6021_s6 }
  0x1b   :  { %6679 = sst [smem:[#allocation16_spill]] %s6026_s12 }
  0x1c   :  { %s6046_s17 = sld [smem:[%s6652_s0 + %s5925_s7]]   ;;  %s5929_s7 = smov 22  }
  0x1d   :  { %s6051_s6 = sld [smem:[%s6652_s0 + %s5926_s15]]   ;;  %s5930_s15 = smov 23  }
  0x1e   :  { %s6056_s30 = sld [smem:[%s6652_s0 + %s5927_s22]]   ;;  %s5931_s22 = smov 24  }
  0x1f   :  { %6680 = sst [smem:[#allocation17_spill]] %s6041_s4 }
  0x20   :  { %s6061_s4 = sld [smem:[%s6652_s0 + %s5928_s28]]   ;;  %s5932_s28 = smov 25  }
  0x22   :  { %6681 = sst [smem:[#allocation18_spill]] %s6046_s17 }
  0x23   :  { %6682 = sst [smem:[#allocation19_spill]] %s6051_s6 }
  0x24   :  { %6683 = sst [smem:[#allocation20_spill]] %s6056_s30 }
  0x25   :  { %s6066_s17 = sld [smem:[%s6652_s0 + %s5929_s7]]   ;;  %s5933_s7 = smov 26  }
  0x26   :  { %6684 = sst [smem:[#allocation21_spill]] %s6061_s4 }
  0x27   :  { %s6071_s6 = sld [smem:[%s6652_s0 + %s5930_s15]]   ;;  %s5934_s15 = smov 27  }
  0x28   :  { %s6076_s30 = sld [smem:[%s6652_s0 + %s5931_s22]]   ;;  %s5935_s22 = smov 28  }
  0x29   :  { %s6081_s4 = sld [smem:[%s6652_s0 + %s5932_s28]]   ;;  %s5936_s28 = smov 29  }
  0x2b   :  { %6685 = sst [smem:[#allocation22_spill]] %s6066_s17 }
  0x2c   :  { %s6086_s17 = sld [smem:[%s6652_s0 + %s5933_s7]]   ;;  %s5937_s7 = smov 30  }
  0x2d   :  { %6686 = sst [smem:[#allocation23_spill]] %s6071_s6 }
  0x2e   :  { %6687 = sst [smem:[#allocation24_spill]] %s6076_s30 }
  0x2f   :  { %6688 = sst [smem:[#allocation25_spill]] %s6081_s4 }
  0x30   :  { %s6091_s6 = sld [smem:[%s6652_s0 + %s5934_s15]]   ;;  %s5938_s15 = smov 31  }
  0x31   :  { %s6096_s30 = sld [smem:[%s6652_s0 + %s5935_s22]]  }
  0x32   :  { %6689 = sst [smem:[#allocation26_spill]] %s6086_s17 }
  0x33   :  { %s6101_s4 = sld [smem:[%s6652_s0 + %s5936_s28]]  }
  0x34   :  { %s6106_s17 = sld [smem:[%s6652_s0 + %s5937_s7]]  }
  0x36   :  { %6690 = sst [smem:[#allocation27_spill]] %s6091_s6 }
  0x37   :  { %s6111_s6 = sld [smem:[%s6652_s0 + %s5938_s15]]  }
  0x39   :  { %6691 = sst [smem:[#allocation28_spill]] %s6101_s4 }
  0x3a   :  { %69 = vsyncpa [#allocation3], 0 }
  0x3b   :  { %71 = vsyncpa [#allocation3 + $0x1], 0 }
  0x3c   :  { %72 = vsyncpa [#allocation5], 0 }
  0x3d   :  { %74 = vsyncpa [#allocation5 + $0x1], 0  ;;  %s6113_s22 = smov 0   ;;  %s6115_s23 = smov 0  }
  0x3e   :  { %s6117_s26 = smov 0   ;;  %s6119_s28 = smov 0  }
  0x3f LB: > { %s6692_s4 = sld [smem:[#allocation28_spill]]  ;;  %s6693_s12 = sld [smem:[#allocation16_spill]]  ;;  %s5902_s26 = sphi %s6117_s26, %s6723_s26   ;;  %s5898_s23 = sphi %s6115_s23, %s6725_s23   ;;  %s5894_s22 = sphi %s6113_s22, %s6724_s22   ;;  %s5906_s28 = sphi %s6119_s28, %s6726_s28  }
  0x40   : > { %s6694_s8 = sld [smem:[#allocation13_spill]]  ;;  %s6134_s0 = sadd.s32 4294967295, %s5906_s28  }
  0x41   : > { %6695 = sst [smem:[#allocation29_spill]] %s5902_s26  ;;  %s4992_s1 = sadd.s32 4294967294, %s5906_s28  }
  0x42   : > { %s6138_s2 = sadd.s32 1, %s5906_s28   ;;  %s737_s7 = sadd.s32 1, %s5902_s26 }
  0x43   : > { %s734_s10 = ssub.s32 %s5906_s28, %s6138_s2  ;;  %p747_p0 = scmp.ne.s32.totalorder %s5902_s26, %s5898_s23 }
  0x44   : > { %p735_p1 = scmp.eq.s32.totalorder %s734_s10, 0  ;;  %p748_p2 = scmp.eq.s32.totalorder %s6134_s0, 1 }
  0x45   : > { %p753_p3 = scmp.ne.s32.totalorder %s5898_s23, %s5894_s22  ;;  %p754_p4 = scmp.eq.s32.totalorder %s4992_s1, 1 }
  0x46   : > { %s6149_s11 = scalar_select %p735_p1, %s5902_s26, %s737_s7  }
  0x47   : > { %p6151_p5 = por %p748_p2, %p747_p0  ;;  %p6155_p6 = por %p754_p4, %p753_p3 }
  0x48   : > { %6696 = sst [smem:[#allocation30_spill]] %s6149_s11  ;;  %p4995_p7 = scmp.ge.s32.totalorder %s5906_s28, 1 }
  0x49   : > { %p906_p8 = scmp.lt.s32.totalorder %s5906_s28, 3 }
  0x4b   : > { %p907_p9 = pnand %p4995_p7, %p906_p8 }
  0x4c   : > { %s6699_s5 = sld [smem:[#allocation8_spill]] (!%p907_p9)  ;;  %s6700_s9 = sld [smem:[#allocation9_spill]] (!%p907_p9)  ;;  %vm1059_vm0 = vcmask (!%p907_p9), 261120   ;;  %v5005_v25 = vld [vmem:[%s5981_s25] ss:$0 sm:$0xff] (!%p907_p9)  ;;  %v1036_v63 = vld [vmem:[%s6694_s8 + $0x8] sm:$0xff] (!%p907_p9) }
  0x4d   : > { %910 = sbr.rel (%p907_p9) target bundleno = 5737 (0x1669), region = 140  ;;  %p1004_p10 = scmp.lt.s32.totalorder (!%p907_p9), %s6134_s0, 1  ;;  %v5004_v26 = vld [vmem:[%s5976_s21] ss:$0 sm:$0xff] (!%p907_p9)  ;;  %vm6213_vm1 = vmpackc.low (!%p907_p9), %vm1059_vm0, %vm1059_vm0  ;;  %vm1588_vm2 = vcmask (!%p907_p9), 64512   ;;  %vm4794_vm5 = vcmask (!%p907_p9), 523264  }
  0x4e   : > { %s6660_s26 = smov (!%p907_p9), 96   ;;  %s6701_s3 = sld [smem:[#allocation12_spill]] (!%p907_p9)  ;;  %v5006_v27 = vld [vmem:[%s5986_s29] ss:$0 sm:$0xff] (!%p907_p9)  ;;  %vm5942_vm6 = vmmov (!%p907_p9), 0   ;;  %vm3862_vm7 = vcmask (!%p907_p9), 130048  }
  0x4f   : > { %v1035_v43 = vld [vmem:[%s6694_s8] sm:$0xff] (!%p907_p9)  ;;  %s6704_s13 = sld [smem:[#allocation10_spill]] (!%p907_p9) }
  0x50   : > { %5263 = vmatprep.mubr.msk.f32.mxu0 (!%p907_p9), %vm1059_vm0, %v1035_v43 }
  0x54   : > { %s6163_s18 = scalar_select %p1004_p10, %s6134_s0, 1  ;;  %v5007_v28 = vld [vmem:[%s6701_s3] ss:$0 sm:$0xff] }
  0x55   : > { %s6708_s3 = sld [smem:[#allocation17_spill]] }
  0x56   : > { %s5106_s1 = sshll.u32 %s6163_s18, 4  ;;  %s6659_s7 = sshll.u32 %s6163_s18, 3 }
  0x57   : > { %s1008_s10 = scalar_lea.vmem %s6699_s5, %s5106_s1  ;;  %s6175_s11 = scalar_lea.vmem %s6700_s9, %s6659_s7 }
  0x58   : > { %v6170_v0 = vld [vmem:[%s1008_s10] sm:$0xff]  ;;  %v6180_v2 = vld [vmem:[%s1008_s10 + $0x8] sm:$0xff]  ;;  %s6662_s10 = smov 32   ;;  %s1017_s7 = scalar_lea.vmem %s6704_s13, %s5106_s1 }
  0x59   : > { %1053 = vrot.lane.b32.xlu0 %v6170_v0, %s6660_s26  ;;  %v1024_v1 = vld [vmem:[%s6175_s11] sm:$0xff]  ;;  %s6705_s1 = sld [smem:[#allocation14_spill]]  ;;  %s6710_s5 = sld [smem:[#allocation20_spill]] }
  0x5a   : > { %1116 = vrot.lane.b32.xlu1 %v1024_v1, %s6660_s26  ;;  %s6712_s9 = smov 32  }
  0x5d   : > { %1055 = vrot.lane.b32.xlu0 %v6180_v2, %s6660_s26 }
  0xcb   : > { %v1054_v3 = vpop.permute.xlu0 %1053 }
  0xcc   : > { %v1060_v4 = vsel %vm1059_vm0, %v1054_v3, 0.0  ;;  %v1117_v6 = vpop.permute.xlu1 %1116  ;;  %v1038_v3 = vld [vmem:[%s6694_s8 + $0x18] sm:$0xff] }
  0xcd   : > { %1061 = vadd.xlane.f32.xlu1 %v1060_v4  ;;  %v1119_v8 = vsel %vm1059_vm0, %v1117_v6, 0.0  ;;  %v1039_v4 = vld [vmem:[%s6001_s14] sm:$0xff]  ;;  %v1040_v6 = vld [vmem:[%s6001_s14 + $0x8] sm:$0xff] }
  0xcf   : > { %v1056_v5 = vpop.permute.xlu0 %1055 }
  0xd0   : > { %v1063_v7 = vsel %vm1059_vm0, %v1056_v5, 0.0 }
  0xd1   : > { %1064 = vadd.xlane.f32.xlu0 %v1063_v7  ;;  %v1041_v7 = vld [vmem:[%s6001_s14 + $0x10] sm:$0xff] }
  0xd5   : > { %1120 = vadd.xlane.f32.xlu0 %v1119_v8  ;;  %v1042_v8 = vld [vmem:[%s6001_s14 + $0x18] sm:$0xff] }
 0x15a   : > { %v1062_v9 = vpop.xlane.xlu1 %1061 }
 0x15b   : > { %v1067_v10 = vmul.f32 0.03125, %v1062_v9  ;;  %v1043_v9 = vld [vmem:[%s6006_s19] sm:$0xff] }
 0x15d   : > { %v1069_v11 = vsub.f32 %v6170_v0, %v1067_v10  ;;  %v1044_v10 = vld [vmem:[%s6006_s19 + $0x8] sm:$0xff] }
 0x15e   : > { %v1065_v12 = vpop.xlane.xlu0 %1064 }
 0x15f   : > { %v1068_v13 = vmul.f32 0.03125, %v1065_v12  ;;  %v1071_v14 = vmul.f32 %v1069_v11, %v1069_v11 }
 0x161   : > { %v1070_v15 = vsub.f32 %v6180_v2, %v1068_v13  ;;  %1075 = vrot.lane.b32.xlu1 %v1071_v14, %s6660_s26  ;;  %v1046_v14 = vld [vmem:[%s6006_s19 + $0x18] sm:$0xff] }
 0x162   : > { %v1121_v16 = vpop.xlane.xlu0 %1120 }
 0x163   : > { %v1072_v17 = vmul.f32 %v1070_v15, %v1070_v15  ;;  %v1122_v18 = vmul.f32 0.03125, %v1121_v16 }
 0x165   : > { %1077 = vrot.lane.b32.xlu0 %v1072_v17, %s6660_s26  ;;  %v1123_v19 = vsub.f32 %v1024_v1, %v1122_v18  ;;  %v1037_v1 = vld [vmem:[%s6694_s8 + $0x10] sm:$0xff]  ;;  %s6711_s8 = sld [smem:[#allocation19_spill]] }
 0x167   : > { %v1124_v20 = vmul.f32 %v1123_v19, %v1123_v19 }
 0x169   : > { %1126 = vrot.lane.b32.xlu1 %v1124_v20, %s6660_s26 }
 0x1d3   : > { %v1076_v21 = vpop.permute.xlu1 %1075 }
 0x1d4   : > { %v1081_v22 = vsel %vm1059_vm0, %v1076_v21, 0.0 }
 0x1d5   : > { %1082 = vadd.xlane.f32.xlu1 %v1081_v22 }
 0x1d7   : > { %v1078_v23 = vpop.permute.xlu0 %1077 }
 0x1d8   : > { %v1084_v24 = vsel %vm1059_vm0, %v1078_v23, 0.0 }
 0x1d9   : > { %1085 = vadd.xlane.f32.xlu0 %v1084_v24 }
 0x1db   : > { %v1127_v29 = vpop.permute.xlu1 %1126 }
 0x1dc   : > { %v1129_v30 = vsel %vm1059_vm0, %v1127_v29, 0.0 }
 0x1e6   : > { %1110 = vrot.lane.b32.xlu1 %v5005_v25, %s6662_s10 }
 0x1ef   : > { %1100 = vrot.lane.b32.xlu0 %v5004_v26, %s6662_s10 }
 0x1f3   : > { %1141 = vrot.lane.b32.xlu0 %v5006_v27, %s6662_s10 }
 0x1f7   : > { %1150 = vrot.lane.b32.xlu0 %v5007_v28, %s6662_s10 }
 0x20a   : > { %1130 = vadd.xlane.f32.xlu1 %v1129_v30 }
 0x262   : > { %v1083_v31 = vpop.xlane.xlu1 %1082 }
 0x263   : > { %v1087_v32 = vmul.f32 0.03125, %v1083_v31 }
 0x265   : > { %v1089_v33 = vadd.f32 1e-05, %v1087_v32 }
 0x266   : > { %v1086_v34 = vpop.xlane.xlu0 %1085  ;;  %v1111_v44 = vpop.permute.xlu1 %1110 }
 0x267   : > { %5741 = vrsqrt.f32 %v1089_v33  ;;  %v1088_v35 = vmul.f32 0.03125, %v1086_v34  ;;  %v1026_v33 = vld [vmem:[%s1017_s7 + $0x8] sm:$0xff]  ;;  %v1025_v34 = vld [vmem:[%s1017_s7] sm:$0xff]  ;;  %s6706_s7 = sld [smem:[#allocation15_spill]] }
 0x268   : > { %vm1028_vm3 = vcmp.gt.f32.partialorder %v1026_v33, 0.0  ;;  %vm1027_vm4 = vcmp.gt.f32.partialorder %v1025_v34, 0.0 }
 0x269   : > { %v1090_v36 = vadd.f32 1e-05, %v1088_v35 }
 0x26a   : > { %v1101_v39 = vpop.permute.xlu0 %1100 }
 0x26b   : > { %5743 = vrsqrt.f32 %v1090_v36 }
 0x26e   : > { %v1142_v52 = vpop.permute.xlu0 %1141 }
 0x271   : > { %v5742_v37 = vpop.eup %5741 }
 0x272   : > { %v1093_v38 = vmul.f32 %v5742_v37, %v1069_v11  ;;  %v1151_v55 = vpop.permute.xlu0 %1150  ;;  %v1045_v11 = vld [vmem:[%s6006_s19 + $0x10] sm:$0xff] }
 0x274   : > { %v1103_v42 = vmul.f32 %v1101_v39, %v1093_v38 }
 0x275   : > { %v5744_v40 = vpop.eup %5743 }
 0x276   : > { %v1094_v41 = vmul.f32 %v5744_v40, %v1070_v15  ;;  %v1113_v46 = vadd.f32 %v1111_v44, %v1103_v42 }
 0x278   : > { %v1104_v45 = vmul.f32 %v1101_v39, %v1094_v41 }
 0x27a   : > { %v1114_v47 = vadd.f32 %v1111_v44, %v1104_v45 }
 0x27c   : > { %v5731_v48 = vpack.i.bf16 %v1114_v47, %v1113_v46 }
 0x27e   : > { %5732 = vrot.lane.b32.xlu0 %v5731_v48, %s6660_s26 }
 0x297   : > { %v1131_v49 = vpop.xlane.xlu1 %1130 }
 0x298   : > { %v1132_v50 = vmul.f32 0.03125, %v1131_v49 }
 0x29a   : > { %v1133_v51 = vadd.f32 1e-05, %v1132_v50 }
 0x29c   : > { %5745 = vrsqrt.f32 %v1133_v51 }
 0x2a6   : > { %v5746_v53 = vpop.eup %5745 }
 0x2a7   : > { %v6207_v54 = vmul.f32 %v5746_v53, %v1123_v19 }
 0x2a9   : > { %v1144_v56 = vmul.f32 %v1142_v52, %v6207_v54 }
 0x2ab   : > { %v1153_v57 = vadd.f32 %v1151_v55, %v1144_v56 }
 0x2ad   : > { %1262 = vrot.lane.b32.xlu0 %v1153_v57, %s6660_s26 }
 0x2f0   : > { %v5733_v58 = vpop.permute.xlu0 %5732 }
 0x2f1   : > { %v5735_v59 = vunpack.i.h.bf16 %v5733_v58  ;;  %v5734_v60 = vunpack.i.l.bf16 %v5733_v58 }
 0x2f3   : > { %v5547_v62 = vpack.c.bf16 %v5735_v59, %v5734_v60 }
 0x2f5   : > { %5549 = vmatprep.subr.msk.bf16.mxu0 %vm6213_vm1, %v5547_v62 }
 0x2f6   : > { %5552 = vmatpush3.bf16.xpose.msk.msra.mxu0 %vm6213_vm1, %v5547_v62 }
 0x2fd   : > { %5264 = vmatmul.mubr.msk.f32.vlgmr.msra.gmra.mrb[0].mxu0 %vm1059_vm0, %v1036_v63 }
 0x2fe   : > { %5266 = vmatprep.mubr.msk.f32.mxu0 %vm1059_vm0, %v1037_v1 }
 0x301   : > { %5267 = vmatmul.mubr.msk.f32.gmra.mrb[2].mxu0 %vm1059_vm0, %v1038_v3 }
 0x302   : > { %5271 = vmatprep.mubr.msk.f32.mxu0 %vm1059_vm0, %v1039_v4 }
 0x31f   : > { %v1263_v5 = vpop.permute.xlu0 %1262 }
 0x320   : > { %5269 = vmatprep.subr.msk.mxu0 %vm1059_vm0, %v1263_v5 }
 0x321   : > { %5270 = vmatpush3.xpose.msk.msra.mxu0 %vm1059_vm0, %v1263_v5 }
 0x322   : > { %5277 = vmatprep.subr.msk.mxu0 %vm1059_vm0, %v1263_v5 }
 0x324   : > { %5272 = vmatmul.mubr.msk.f32.vlgmr.msra.gmra.mrb[4].mxu0 %vm1059_vm0, %v1040_v6 }
 0x325   : > { %5278 = vmatpush3.xpose.msk.msra.mxu0 %vm1059_vm0, %v1263_v5  ;;  %5274 = vmatprep.mubr.msk.f32.mxu0 %vm1059_vm0, %v1041_v7 }
 0x328   : > { %5275 = vmatmul.mubr.msk.f32.gmra.mrb[6].mxu0 %vm1059_vm0, %v1042_v8 }
 0x329   : > { %5279 = vmatprep.mubr.msk.f32.mxu0 %vm1059_vm0, %v1043_v9 }
 0x32c   : > { %5280 = vmatmul.mubr.msk.f32.vlgmr.msra.gmra.mrb[8].mxu0 %vm1059_vm0, %v1044_v10 }
 0x32d   : > { %5282 = vmatprep.mubr.msk.f32.mxu0 %vm1059_vm0, %v1045_v11 }
 0x330   : > { %5283 = vmatmul.mubr.msk.f32.gmra.mrb[10].mxu0 %vm1059_vm0, %v1046_v14 }
 0x3d0   : > { %v5265_v12 = vpop.f32.mrb[0].mxu0 }
 0x3d1   : > { %1492 = vxpose.xlu1.b32.start.end [1/1] (short) (narrow) %v5265_v12, 16  ;;  %v1242_v13 = vpop.f32.mrb[1].mxu0 }
 0x3d2   : > { %1460 = vxpose.xlu0.b32.start.end [1/1] (short) (narrow) %v1242_v13, 16 }
 0x3d4   : > { %v5268_v15 = vpop.f32.mrb[2].mxu0 }
 0x3d5   : > { %v1252_v16 = vpop.f32.mrb[3].mxu0 }
 0x3d7   : > { %1524 = vxpose.xlu0.b32.start.end [1/1] (short) (narrow) %v1252_v16, 16 }
 0x3dc   : > { %1556 = vxpose.xlu0.b32.start.end [1/1] (short) (narrow) %v5268_v15, 16 }
 0x3f7   : > { %v5273_v17 = vpop.f32.mrb[4].mxu0 }
 0x3f8   : > { %v1344_v18 = vpop.f32.mrb[5].mxu0  ;;  %5290 = vmatprep.subr.mxu0 %v5273_v17 }
 0x3f9   : > { %5285 = vmatprep.subr.mxu1 %v1344_v18  ;;  %5291 = vmatpush3.msra.mxu0 %v5273_v17 }
 0x3fa   : > { %5286 = vmatpush3.msra.mxu1 %v1344_v18 }
 0x3fb   : > { %v5276_v19 = vpop.f32.mrb[6].mxu0 }
 0x3fc   : > { %v1354_v20 = vpop.f32.mrb[7].mxu0  ;;  %5300 = vmatprep.subr.mxu0 %v5276_v19 }
 0x3fd   : > { %5295 = vmatprep.subr.mxu1 %v1354_v20 }
 0x3ff   : > { %v5281_v21 = vpop.f32.mrb[8].mxu0 }
 0x400   : > { %v1441_v22 = vpop.f32.mrb[9].mxu0 }
 0x403   : > { %v6259_v31 = vpop.f32.mrb[10].mxu0 }
 0x404   : > { %v6261_v32 = vpop.f32.mrb[11].mxu0 }
 0x451   : > { %v1508_v23 = vpop.trf.xlu1 }
 0x452   : > { %v1476_v24 = vpop.trf.xlu0  ;;  %5292 = vmatprep.mubr.msk.f32.mxu0 %vm1588_vm2, %v1508_v23 }
 0x453   : > { %5287 = vmatprep.mubr.msk.f32.mxu1 %vm1588_vm2, %v1476_v24 }
 0x455   : > { %v1509_v25 = vpop.trf.xlu1 }
 0x456   : > { %v1477_v26 = vpop.trf.xlu0  ;;  %5293 = vmatmul.mubr.msk.f32.vlgmr.msra.gmra.mrb[12].mxu0 %vm1588_vm2, %v1509_v25 }
 0x457   : > { %5288 = vmatmul.mubr.msk.f32.vlgmr.msra.gmra.mrb[0].mxu1 %vm1588_vm2, %v1477_v26  ;;  %5301 = vmatpush3.msra.mxu0 %v5276_v19 }
 0x458   : > { %5296 = vmatpush3.msra.mxu1 %v1354_v20  ;;  %5310 = vmatprep.subr.msk.mxu0 %vm1588_vm2, %v5281_v21 }
 0x459   : > { %5305 = vmatprep.subr.msk.mxu1 %vm1588_vm2, %v1441_v22 }
 0x45a   : > { %v1540_v27 = vpop.trf.xlu0 }
 0x45b   : > { %5297 = vmatprep.mubr.msk.f32.mxu1 %vm1588_vm2, %v1540_v27 }
 0x45e   : > { %v1541_v28 = vpop.trf.xlu0 }
 0x45f   : > { %5298 = vmatmul.mubr.msk.f32.vlgmr.msra.gmra.mrb[2].mxu1 %vm1588_vm2, %v1541_v28 }
 0x460   : > { %5306 = vmatpush3.xpose.msk.msra.mxu1 %vm1588_vm2, %v1441_v22 }
 0x461   : > { %5315 = vmatprep.subr.msk.mxu1 %vm1588_vm2, %v6261_v32 }
 0x462   : > { %v1572_v29 = vpop.trf.xlu0 }
 0x463   : > { %5302 = vmatprep.mubr.msk.f32.mxu0 %vm1588_vm2, %v1572_v29 }
 0x466   : > { %v1573_v30 = vpop.trf.xlu0 }
 0x467   : > { %5303 = vmatmul.mubr.msk.f32.vlgmr.msra.gmra.mrb[14].mxu0 %vm1588_vm2, %v1573_v30 }
 0x468   : > { %5311 = vmatpush3.xpose.msk.msra.mxu0 %vm1588_vm2, %v5281_v21 }
 0x469   : > { %5320 = vmatprep.subr.msk.mxu0 %vm1588_vm2, %v6259_v31 }
 0x529   : > { %v5294_v35 = vpop.f32.mrb[12].mxu0 }
 0x52a   : > { %v1916_v36 = vmul.f32 0.35355338, %v5294_v35  ;;  %v5289_v37 = vpop.f32.mrb[0].mxu1  ;;  %v1742_v38 = vpop.f32.mrb[13].mxu0 }
 0x52b   : > { %v1914_v39 = vmul.f32 0.35355338, %v5289_v37  ;;  %v1661_v40 = vpop.f32.mrb[1].mxu1  ;;  %v1915_v41 = vmul.f32 0.35355338, %v1742_v38 }
 0x52c   : > { %v1913_v42 = vmul.f32 0.35355338, %v1661_v40  ;;  %v1928_v43 = vsel %vm1028_vm3, %v1916_v36, -1e+09 }
 0x52d   : > { %v1942_v44 = vsel %vm1588_vm2, %v1928_v43, -inf  ;;  %v1926_v45 = vsel %vm1028_vm3, %v1914_v39, -1e+09  ;;  %v1927_v46 = vsel %vm1027_vm4, %v1915_v41, -1e+09 }
 0x52e   : > { %1943 = vmax.xlane.f32.xlu0 %v1942_v44  ;;  %v1936_v47 = vsel %vm1588_vm2, %v1926_v45, -inf  ;;  %v1925_v48 = vsel %vm1027_vm4, %v1913_v42, -1e+09  ;;  %v1939_v49 = vsel %vm1588_vm2, %v1927_v46, -inf }
 0x52f   : > { %1937 = vmax.xlane.f32.xlu1 %v1936_v47  ;;  %v1933_v55 = vsel %vm1588_vm2, %v1925_v48, -inf }
 0x532   : > { %v5299_v50 = vpop.f32.mrb[2].mxu1  ;;  %1940 = vmax.xlane.f32.xlu0 %v1939_v49 }
 0x533   : > { %v1918_v51 = vmul.f32 0.35355338, %v5299_v50  ;;  %v1823_v52 = vpop.f32.mrb[3].mxu1 }
 0x534   : > { %v1917_v53 = vmul.f32 0.35355338, %v1823_v52 }
 0x535   : > { %v1930_v56 = vsel %vm1028_vm3, %v1918_v51, -1e+09 }
 0x536   : > { %1934 = vmax.xlane.f32.xlu0 %v1933_v55  ;;  %v1929_v57 = vsel %vm1027_vm4, %v1917_v53, -1e+09  ;;  %v1948_v58 = vsel %vm1588_vm2, %v1930_v56, -inf }
 0x537   : > { %v1945_v5 = vsel %vm1588_vm2, %v1929_v57, -inf }
 0x53a   : > { %1949 = vmax.xlane.f32.xlu0 %v1948_v58  ;;  %v5304_v59 = vpop.f32.mrb[14].mxu0 }
 0x53b   : > { %v1920_v60 = vmul.f32 0.35355338, %v5304_v59  ;;  %v1904_v62 = vpop.f32.mrb[15].mxu0 }
 0x53c   : > { %v1919_v63 = vmul.f32 0.35355338, %v1904_v62 }
 0x53d   : > { %v1932_v1 = vsel %vm1028_vm3, %v1920_v60, -1e+09 }
 0x53e   : > { %v1931_v3 = vsel %vm1027_vm4, %v1919_v63, -1e+09  ;;  %v1954_v6 = vsel %vm1588_vm2, %v1932_v1, -inf }
 0x53f   : > { %v1951_v4 = vsel %vm1588_vm2, %v1931_v3, -inf }
 0x540   : > { %1952 = vmax.xlane.f32.xlu0 %v1951_v4 }
 0x544   : > { %1946 = vmax.xlane.f32.xlu0 %v1945_v5 }
 0x548   : > { %1955 = vmax.xlane.f32.xlu0 %v1954_v6 }
 0x5bb   : > { %v1944_v7 = vpop.xlane.xlu0 %1943 }
 0x5bc   : > { %v1960_v8 = vsub.f32 %v1928_v43, %v1944_v7  ;;  %v1938_v9 = vpop.xlane.xlu1 %1937 }
 0x5bd   : > { %v1958_v10 = vsub.f32 %v1926_v45, %v1938_v9 }
 0x5be   : > { %v1971_v11 = vmul.f32 1.442695, %v1960_v8 }
 0x5bf   : > { %v1967_v12 = vmul.f32 1.442695, %v1958_v10  ;;  %v1941_v13 = vpop.xlane.xlu0 %1940 }
 0x5c0   : > { %5747 = vpow2.f32 %v1971_v11  ;;  %v1959_v14 = vsub.f32 %v1927_v46, %v1941_v13  ;;  %v1048_v11 = vld [vmem:[%s6011_s24 + $0x8] sm:$0xff]  ;;  %v1049_v13 = vld [vmem:[%s6011_s24 + $0x10] sm:$0xff] }
 0x5c1   : > { %5749 = vpow2.f32 %v1967_v12  ;;  %v1047_v12 = vld [vmem:[%s6011_s24] sm:$0xff] }
 0x5c2   : > { %v1969_v15 = vmul.f32 1.442695, %v1959_v14  ;;  %v1050_v14 = vld [vmem:[%s6011_s24 + $0x18] sm:$0xff] }
 0x5c3   : > { %v1935_v16 = vpop.xlane.xlu0 %1934 }
 0x5c4   : > { %5751 = vpow2.f32 %v1969_v15  ;;  %v1957_v17 = vsub.f32 %v1925_v48, %v1935_v16 }
 0x5c6   : > { %v1965_v18 = vmul.f32 1.442695, %v1957_v17 }
 0x5c7   : > { %v1950_v19 = vpop.xlane.xlu0 %1949 }
 0x5c8   : > { %5753 = vpow2.f32 %v1965_v18  ;;  %v1962_v20 = vsub.f32 %v1930_v56, %v1950_v19 }
 0x5ca   : > { %v5748_v21 = vpop.eup %5747  ;;  %v1975_v22 = vmul.f32 1.442695, %v1962_v20 }
 0x5cb   : > { %v1990_v23 = vsel %vm1588_vm2, %v5748_v21, 0.0  ;;  %v5750_v24 = vpop.eup %5749 }
 0x5cc   : > { %5755 = vpow2.f32 %v1975_v22  ;;  %1991 = vadd.xlane.f32.xlu0 %v1990_v23  ;;  %v1984_v28 = vsel %vm1588_vm2, %v5750_v24, 0.0 }
 0x5cd   : > { %v1953_v25 = vpop.xlane.xlu0 %1952 }
 0x5ce   : > { %v5752_v26 = vpop.eup %5751  ;;  %v1963_v29 = vsub.f32 %v1931_v3, %v1953_v25 }
 0x5cf   : > { %v1987_v27 = vsel %vm1588_vm2, %v5752_v26, 0.0 }
 0x5d0   : > { %1988 = vadd.xlane.f32.xlu1 %v1987_v27  ;;  %1985 = vadd.xlane.f32.xlu0 %v1984_v28  ;;  %v1977_v36 = vmul.f32 1.442695, %v1963_v29 }
 0x5d1   : > { %v1947_v30 = vpop.xlane.xlu0 %1946 }
 0x5d2   : > { %v5754_v33 = vpop.eup %5753  ;;  %v1961_v34 = vsub.f32 %v1929_v57, %v1947_v30 }
 0x5d3   : > { %v1981_v35 = vsel %vm1588_vm2, %v5754_v33, 0.0 }
 0x5d4   : > { %v1973_v37 = vmul.f32 1.442695, %v1961_v34  ;;  %1982 = vadd.xlane.f32.xlu1 %v1981_v35 }
 0x5d5   : > { %v1956_v38 = vpop.xlane.xlu0 %1955 }
 0x5d6   : > { %v5756_v39 = vpop.eup %5755  ;;  %5757 = vpow2.f32 %v1973_v37  ;;  %v1964_v40 = vsub.f32 %v1932_v1, %v1956_v38 }
 0x5d7   : > { %v1996_v41 = vsel %vm1588_vm2, %v5756_v39, 0.0  ;;  %5759 = vpow2.f32 %v1977_v36 }
 0x5d8   : > { %v1979_v42 = vmul.f32 1.442695, %v1964_v40  ;;  %1997 = vadd.xlane.f32.xlu0 %v1996_v41 }
 0x5da   : > { %5761 = vpow2.f32 %v1979_v42 }
 0x5e0   : > { %v5758_v43 = vpop.eup %5757 }
 0x5e1   : > { %v1993_v44 = vsel %vm1588_vm2, %v5758_v43, 0.0  ;;  %v5760_v45 = vpop.eup %5759 }
 0x5e2   : > { %1994 = vadd.xlane.f32.xlu1 %v1993_v44  ;;  %v1999_v47 = vsel %vm1588_vm2, %v5760_v45, 0.0 }
 0x5e4   : > { %v5762_v46 = vpop.eup %5761 }
 0x5e5   : > { %v2002_v48 = vsel %vm1588_vm2, %v5762_v46, 0.0 }
 0x5e6   : > { %2000 = vadd.xlane.f32.xlu1 %v1999_v47  ;;  %2003 = vadd.xlane.f32.xlu0 %v2002_v48 }
 0x659   : > { %v1992_v49 = vpop.xlane.xlu0 %1991 }
 0x65a   : > { %5763 = vrcp.f32 %v1992_v49 }
 0x65d   : > { %v1989_v50 = vpop.xlane.xlu1 %1988  ;;  %v1986_v51 = vpop.xlane.xlu0 %1985 }
 0x65e   : > { %5765 = vrcp.f32 %v1989_v50 }
 0x65f   : > { %5767 = vrcp.f32 %v1986_v51 }
 0x661   : > { %v1983_v52 = vpop.xlane.xlu1 %1982 }
 0x662   : > { %5769 = vrcp.f32 %v1983_v52 }
 0x664   : > { %v5764_v53 = vpop.eup %5763 }
 0x665   : > { %v2016_v57 = vmul.f32 %v5764_v53, %v5748_v21  ;;  %v1998_v60 = vpop.xlane.xlu0 %1997 }
 0x666   : > { %5771 = vrcp.f32 %v1998_v60 }
 0x668   : > { %v5766_v55 = vpop.eup %5765 }
 0x669   : > { %v2015_v56 = vmul.f32 %v5766_v55, %v5752_v26  ;;  %v5768_v58 = vpop.eup %5767 }
 0x66a   : > { %v2014_v63 = vmul.f32 %v5768_v58, %v5750_v24 }
 0x66b   : > { %5312 = vmatprep.mubr.msk.f32.mxu0 %vm1588_vm2, %v2015_v56 }
 0x66c   : > { %v5770_v59 = vpop.eup %5769  ;;  %5313 = vmatmul.mubr.msk.f32.vlgmr.msra.gmra.mrb[16].mxu0 %vm1588_vm2, %v2016_v57 }
 0x66d   : > { %5321 = vmatpush3.xpose.msk.msra.mxu0 %vm1588_vm2, %v6259_v31  ;;  %v2013_v62 = vmul.f32 %v5770_v59, %v5754_v33 }
 0x66e   : > { %5330 = vmatprep.subr.mxu0 %v1048_v11 }
 0x66f   : > { %5307 = vmatprep.mubr.msk.f32.mxu1 %vm1588_vm2, %v2013_v62  ;;  %v1995_v1 = vpop.xlane.xlu1 %1994 }
 0x670   : > { %5773 = vrcp.f32 %v1995_v1  ;;  %5308 = vmatmul.mubr.msk.f32.vlgmr.msra.gmra.mrb[4].mxu1 %vm1588_vm2, %v2014_v63  ;;  %v5772_v5 = vpop.eup %5771  ;;  %v2699_v63 = vld [vmem:[%s6693_s12] sm:$0xff]  ;;  %v2700_v1 = vld [vmem:[%s6693_s12 + $0x8] sm:$0xff] }
 0x671   : > { %5316 = vmatpush3.xpose.msk.msra.mxu1 %vm1588_vm2, %v6261_v32  ;;  %v2018_v7 = vmul.f32 %v5772_v5, %v5756_v39  ;;  %v2704_v5 = vld [vmem:[%s6031_s20 + $0x8] sm:$0xff] }
 0x672   : > { %5325 = vmatprep.subr.mxu1 %v1047_v12 }
 0x673   : > { %v2001_v3 = vpop.xlane.xlu1 %2000  ;;  %v2004_v4 = vpop.xlane.xlu0 %2003 }
 0x674   : > { %5775 = vrcp.f32 %v2001_v3  ;;  %v2703_v3 = vld [vmem:[%s6031_s20] sm:$0xff] }
 0x675   : > { %5777 = vrcp.f32 %v2004_v4  ;;  %v5553_v4 = vpack.c.bf16 %v2700_v1, %v2699_v63 }
 0x67a   : > { %v5774_v31 = vpop.eup %5773 }
 0x67b   : > { %v2017_v6 = vmul.f32 %v5774_v31, %v5758_v43  ;;  %v5561_v31 = vpack.c.bf16 %v2704_v5, %v2703_v3 }
 0x67d   : > { %5317 = vmatprep.mubr.msk.f32.mxu1 %vm1588_vm2, %v2017_v6  ;;  %v2701_v6 = vld [vmem:[%s6693_s12 + $0x10] sm:$0xff] }
 0x67e   : > { %v5776_v8 = vpop.eup %5775  ;;  %5318 = vmatmul.mubr.msk.f32.vlgmr.msra.gmra.mrb[6].mxu1 %vm1588_vm2, %v2018_v7  ;;  %v2702_v7 = vld [vmem:[%s6693_s12 + $0x18] sm:$0xff]  ;;  %s6713_s12 = sld [smem:[#allocation21_spill]] }
 0x67f   : > { %v5778_v9 = vpop.eup %5777  ;;  %v2019_v10 = vmul.f32 %v5776_v8, %v5760_v45  ;;  %5326 = vmatpush3.msra.mxu1 %v1047_v12  ;;  %v2705_v8 = vld [vmem:[%s6031_s20 + $0x10] sm:$0xff]  ;;  %v2708_v12 = vld [vmem:[%s6036_s27 + $0x8] sm:$0xff] }
 0x680   : > { %v2020_v32 = vmul.f32 %v5778_v9, %v5762_v46  ;;  %5335 = vmatprep.subr.mxu1 %v1049_v13  ;;  %v5557_v9 = vpack.c.bf16 %v2702_v7, %v2701_v6 }
 0x681   : > { %5322 = vmatprep.mubr.msk.f32.mxu0 %vm1588_vm2, %v2019_v10  ;;  %v2706_v10 = vld [vmem:[%s6031_s20 + $0x18] sm:$0xff] }
 0x682   : > { %5323 = vmatmul.mubr.msk.f32.vlgmr.msra.gmra.mrb[18].mxu0 %vm1588_vm2, %v2020_v32  ;;  %v5565_v32 = vpack.c.bf16 %v2706_v10, %v2705_v8 }
 0x683   : > { %5331 = vmatpush3.msra.mxu0 %v1048_v11  ;;  %v2707_v11 = vld [vmem:[%s6036_s27] sm:$0xff] }
 0x684   : > { %5340 = vmatprep.subr.mxu0 %v1050_v14 }
 0x73f   : > { %v5314_v15 = vpop.f32.mrb[16].mxu0 }
 0x740   : > { %v2180_v16 = vpop.f32.mrb[17].mxu0 }
 0x741   : > { %5332 = vmatprep.mubr.msk.f32.mxu0 %vm1588_vm2, %v2180_v16 }
 0x742   : > { %5333 = vmatmul.mubr.msk.f32.vlgmr.msra.gmra.mrb[20].mxu0 %vm1588_vm2, %v5314_v15 }
 0x743   : > { %v5309_v17 = vpop.f32.mrb[4].mxu1  ;;  %5341 = vmatpush3.msra.mxu0 %v1050_v14 }
 0x744   : > { %v2096_v18 = vpop.f32.mrb[5].mxu1  ;;  %5562 = vmatprep.subr.bf16.mxu0 %v5561_v31 }
 0x745   : > { %5327 = vmatprep.mubr.msk.f32.mxu1 %vm1588_vm2, %v2096_v18 }
 0x746   : > { %5328 = vmatmul.mubr.msk.f32.vlgmr.msra.gmra.mrb[8].mxu1 %vm1588_vm2, %v5309_v17 }
 0x747   : > { %5336 = vmatpush3.msra.mxu1 %v1049_v13  ;;  %v5569_v13 = vpack.c.bf16 %v2708_v12, %v2707_v11 }
 0x748   : > { %5554 = vmatprep.subr.bf16.mxu1 %v5553_v4 }
 0x751   : > { %v5319_v19 = vpop.f32.mrb[6].mxu1 }
 0x752   : > { %v2264_v20 = vpop.f32.mrb[7].mxu1 }
 0x753   : > { %5337 = vmatprep.mubr.msk.f32.mxu1 %vm1588_vm2, %v2264_v20 }
 0x754   : > { %5338 = vmatmul.mubr.msk.f32.vlgmr.msra.gmra.mrb[10].mxu1 %vm1588_vm2, %v5319_v19 }
 0x755   : > { %v5324_v21 = vpop.f32.mrb[18].mxu0  ;;  %5556 = vmatpush3.bf16.msra.mxu1 %v5553_v4 }
 0x756   : > { %v2348_v22 = vpop.f32.mrb[19].mxu0  ;;  %5558 = vmatprep.subr.bf16.mxu1 %v5557_v9 }
 0x757   : > { %5342 = vmatprep.mubr.msk.f32.mxu0 %vm1588_vm2, %v2348_v22 }
 0x758   : > { %5343 = vmatmul.mubr.msk.f32.vlgmr.msra.gmra.mrb[22].mxu0 %vm1588_vm2, %v5324_v21  ;;  %v5052_v21 = vld [vmem:[%s6705_s1] ss:$0 sm:$0xff]  ;;  %s6373_s1 = sand.u32 1, %s5898_s23  }
 0x759   : > { %5564 = vmatpush3.bf16.msra.mxu0 %v5561_v31  ;;  %5560 = vmatpush3.bf16.msra.mxu1 %v5557_v9 }
 0x75a   : > { %5566 = vmatprep.subr.bf16.mxu0 %v5565_v32  ;;  %5570 = vmatprep.subr.bf16.mxu1 %v5569_v13 }
 0x75d   : > { %5568 = vmatpush3.bf16.msra.mxu0 %v5565_v32 }
 0x815   : > { %v5334_v23 = vpop.f32.mrb[20].mxu0 }
 0x816   : > { %v2510_v24 = vpop.f32.mrb[21].mxu0  ;;  %v2689_v26 = vsel %vm1059_vm0, %v5334_v23, 0.0 }
 0x817   : > { %v2682_v29 = vsel %vm1059_vm0, %v2510_v24, 0.0 }
 0x819   : > { %v5329_v25 = vpop.f32.mrb[8].mxu1 }
 0x81a   : > { %v2688_v27 = vsel %vm1059_vm0, %v5329_v25, 0.0  ;;  %v2429_v28 = vpop.f32.mrb[9].mxu1  ;;  %v5053_v25 = vld [vmem:[%s6706_s7] ss:$0 sm:$0xff]  ;;  %s4996_s7 = sshll.u32 %s6373_s1, 4 }
 0x81b   : > { %v2690_v30 = vadd.f32 %v2689_v26, %v2688_v27  ;;  %v2681_v33 = vsel %vm1059_vm0, %v2429_v28, 0.0  ;;  %s6380_s26 = scalar_lea.vmem [#allocation2], %s4996_s7  ;;  %s6709_s7 = sld [smem:[#allocation18_spill]] }
 0x81c   : > { %v2683_v34 = vadd.f32 %v2682_v29, %v2681_v33  ;;  %v2710_v33 = vld [vmem:[%s6036_s27 + $0x18] sm:$0xff] }
 0x827   : > { %v5339_v35 = vpop.f32.mrb[10].mxu1 }
 0x828   : > { %v2691_v36 = vsel %vm1059_vm0, %v5339_v35, 0.0  ;;  %v2591_v37 = vpop.f32.mrb[11].mxu1  ;;  %v2711_v35 = vld [vmem:[%s6036_s27 + $0x20] sm:$0xff] }
 0x829   : > { %v2692_v38 = vadd.f32 %v2691_v36, %v2690_v30  ;;  %v2684_v39 = vsel %vm1059_vm0, %v2591_v37, 0.0  ;;  %v2709_v30 = vld [vmem:[%s6036_s27 + $0x10] sm:$0xff]  ;;  %v2712_v36 = vld [vmem:[%s6036_s27 + $0x28] sm:$0xff] }
 0x82a   : > { %v2685_v40 = vadd.f32 %v2684_v39, %v2683_v34  ;;  %v5573_v34 = vpack.c.bf16 %v2710_v33, %v2709_v30  ;;  %v5577_v37 = vpack.c.bf16 %v2712_v36, %v2711_v35  ;;  %v2714_v39 = vld [vmem:[%s6036_s27 + $0x38] sm:$0xff]  ;;  %v5059_v36 = vld [vmem:[%s6709_s7] ss:$0 sm:$0xff] }
 0x82b   : > { %v5344_v41 = vpop.f32.mrb[22].mxu0 }
 0x82c   : > { %v2693_v42 = vsel %vm1059_vm0, %v5344_v41, 0.0  ;;  %v2672_v43 = vpop.f32.mrb[23].mxu0  ;;  %v2715_v41 = vld [vmem:[%s6036_s27 + $0x40] sm:$0xff] }
 0x82d   : > { %v2694_v44 = vadd.f32 %v2693_v42, %v2692_v38  ;;  %v2686_v45 = vsel %vm1059_vm0, %v2672_v43, 0.0  ;;  %v2713_v38 = vld [vmem:[%s6036_s27 + $0x30] sm:$0xff]  ;;  %v2716_v42 = vld [vmem:[%s6036_s27 + $0x48] sm:$0xff] }
 0x82e   : > { %v2687_v46 = vadd.f32 %v2686_v45, %v2685_v40  ;;  %v5581_v40 = vpack.c.bf16 %v2714_v39, %v2713_v38  ;;  %v2717_v43 = vld [vmem:[%s6036_s27 + $0x50] sm:$0xff]  ;;  %v2718_v45 = vld [vmem:[%s6036_s27 + $0x58] sm:$0xff] }
 0x82f   : > { %v6327_v47 = vadd.f32 %v2694_v44, %v6180_v2  ;;  %v5585_v44 = vpack.c.bf16 %v2716_v42, %v2715_v41  ;;  %v5061_v41 = vld [vmem:[%s6710_s5] ss:$0 sm:$0xff]  ;;  %s6714_s5 = sld [smem:[#allocation22_spill]] }
 0x830   : > { %v6330_v48 = vadd.f32 %v2687_v46, %v6170_v0  ;;  %v5589_v46 = vpack.c.bf16 %v2718_v45, %v2717_v43  ;;  %v5060_v43 = vld [vmem:[%s6711_s8] ss:$0 sm:$0xff]  ;;  %s6716_s8 = sld [smem:[#allocation11_spill]] }
 0x831   : > { %v2726_v49 = vsel %vm1059_vm0, %v6327_v47, 0.0 }
 0x832   : > { %2727 = vadd.xlane.f32.xlu0 %v2726_v49  ;;  %v2723_v50 = vsel %vm1059_vm0, %v6330_v48, 0.0  ;;  %v2719_v49 = vld [vmem:[%s6036_s27 + $0x60] sm:$0xff] }
 0x833   : > { %2724 = vadd.xlane.f32.xlu1 %v2723_v50  ;;  %v2720_v50 = vld [vmem:[%s6036_s27 + $0x68] sm:$0xff] }
 0x8bf   : > { %v2728_v51 = vpop.xlane.xlu0 %2727 }
 0x8c0   : > { %v2730_v52 = vmul.f32 0.03125, %v2728_v51  ;;  %v2725_v53 = vpop.xlane.xlu1 %2724  ;;  %v5593_v51 = vpack.c.bf16 %v2720_v50, %v2719_v49  ;;  %v3030_v49 = vld [vmem:[%s6713_s12] sm:$0xff] }
 0x8c1   : > { %v2729_v55 = vmul.f32 0.03125, %v2725_v53  ;;  %v2722_v53 = vld [vmem:[%s6036_s27 + $0x78] sm:$0xff] }
 0x8c2   : > { %v2732_v56 = vsub.f32 %v6327_v47, %v2730_v52  ;;  %v2721_v52 = vld [vmem:[%s6036_s27 + $0x70] sm:$0xff] }
 0x8c3   : > { %v2731_v57 = vsub.f32 %v6330_v48, %v2729_v55  ;;  %v5597_v55 = vpack.c.bf16 %v2722_v53, %v2721_v52 }
 0x8c4   : > { %v2734_v58 = vmul.f32 %v2732_v56, %v2732_v56 }
 0x8c5   : > { %v2733_v59 = vmul.f32 %v2731_v57, %v2731_v57 }
 0x8c6   : > { %v2738_v60 = vsel %vm1059_vm0, %v2734_v58, 0.0 }
 0x8c7   : > { %2739 = vadd.xlane.f32.xlu0 %v2738_v60  ;;  %v2735_v62 = vsel %vm1059_vm0, %v2733_v59, 0.0 }
 0x8c8   : > { %2736 = vadd.xlane.f32.xlu1 %v2735_v62 }
 0x954   : > { %v2740_v14 = vpop.xlane.xlu0 %2739 }
 0x955   : > { %v2742_v15 = vmul.f32 0.03125, %v2740_v14  ;;  %v2737_v16 = vpop.xlane.xlu1 %2736 }
 0x956   : > { %v2741_v17 = vmul.f32 0.03125, %v2737_v16 }
 0x957   : > { %v2744_v18 = vadd.f32 1e-05, %v2742_v15 }
 0x958   : > { %v2743_v19 = vadd.f32 1e-05, %v2741_v17 }
 0x959   : > { %5779 = vrsqrt.f32 %v2744_v18 }
 0x95a   : > { %5781 = vrsqrt.f32 %v2743_v19 }
 0x963   : > { %v5780_v20 = vpop.eup %5779 }
 0x964   : > { %v5782_v22 = vpop.eup %5781  ;;  %v2748_v23 = vmul.f32 %v5780_v20, %v2732_v56 }
 0x965   : > { %v2747_v24 = vmul.f32 %v5782_v22, %v2731_v57 }
 0x966   : > { %v2756_v26 = vmul.f32 %v5052_v21, %v2748_v23 }
 0x967   : > { %v2755_v27 = vmul.f32 %v5052_v21, %v2747_v24 }
 0x968   : > { %v2764_v29 = vadd.f32 %v5053_v25, %v2756_v26 }
 0x969   : > { %v2763_v28 = vadd.f32 %v5053_v25, %v2755_v27 }
 0x96b   : > { %5353 = vmatprep.mubr.msk.f32.mxu1 %vm1059_vm0, %v2763_v28  ;;  %5364 = vmatprep.mubr.msk.f32.mxu0 %vm1059_vm0, %v2763_v28 }
 0x96c   : > { %5354 = vmatmul.mubr.msk.f32.vlgmr.msra.gmra.mrb[12].mxu1 %vm1059_vm0, %v2764_v29  ;;  %5365 = vmatmul.mubr.msk.f32.vlgmr.msra.gmra.mrb[24].mxu0 %vm1059_vm0, %v2764_v29 }
 0x96d   : > { %5572 = vmatpush3.bf16.msra.mxu1 %v5569_v13  ;;  %5404 = vmatprep.mubr.msk.f32.mxu0 %vm1059_vm0, %v3030_v49 }
 0x96e   : > { %5574 = vmatprep.subr.bf16.mxu1 %v5573_v34 }
 0x971   : > { %5576 = vmatpush3.bf16.msra.mxu1 %v5573_v34  ;;  %v5058_v34 = vld [vmem:[%s6708_s3] ss:$0 sm:$0xff]  ;;  %s6715_s3 = sld [smem:[#allocation23_spill]] }
 0x972   : > { %5578 = vmatprep.subr.bf16.mxu1 %v5577_v37 }
 0x975   : > { %5580 = vmatpush3.bf16.msra.mxu1 %v5577_v37 }
 0x976   : > { %5582 = vmatprep.subr.bf16.mxu1 %v5581_v40 }
 0x979   : > { %5584 = vmatpush3.bf16.msra.mxu1 %v5581_v40 }
 0x97a   : > { %5586 = vmatprep.subr.bf16.mxu1 %v5585_v44 }
 0x97d   : > { %5588 = vmatpush3.bf16.msra.mxu1 %v5585_v44 }
 0x97e   : > { %5590 = vmatprep.subr.bf16.mxu1 %v5589_v46 }
 0x981   : > { %5592 = vmatpush3.bf16.msra.mxu1 %v5589_v46 }
 0x982   : > { %5594 = vmatprep.subr.bf16.mxu1 %v5593_v51 }
 0x985   : > { %5596 = vmatpush3.bf16.msra.mxu1 %v5593_v51 }
 0x986   : > { %5598 = vmatprep.subr.bf16.mxu1 %v5597_v55 }
 0x989   : > { %5600 = vmatpush3.bf16.msra.mxu1 %v5597_v55 }
 0xa3f   : > { %v5355_v56 = vpop.f32.mrb[12].mxu1  ;;  %v5366_v57 = vpop.f32.mrb[24].mxu0 }
 0xa40   : > { %v2924_v58 = vmul.f32 0.044715, %v5366_v57  ;;  %v2837_v59 = vpop.f32.mrb[13].mxu1  ;;  %v2912_v60 = vpop.f32.mrb[25].mxu0  ;;  %v2922_v10 = vmul.f32 0.5, %v5366_v57 }
 0xa41   : > { %v2923_v62 = vmul.f32 0.044715, %v2912_v60  ;;  %v2921_v11 = vmul.f32 0.5, %v2912_v60 }
 0xa42   : > { %v2926_v63 = vmul.f32 %v5366_v57, %v2924_v58  ;;  %v3031_v58 = vld [vmem:[%s6713_s12 + $0x8] sm:$0xff] }
 0xa43   : > { %v2925_v1 = vmul.f32 %v2923_v62, %v2912_v60 }
 0xa44   : > { %v2928_v3 = vmul.f32 %v5366_v57, %v2926_v63 }
 0xa45   : > { %v2927_v4 = vmul.f32 %v2925_v1, %v2912_v60 }
 0xa46   : > { %v2930_v5 = vadd.f32 %v5366_v57, %v2928_v3 }
 0xa47   : > { %v2929_v31 = vadd.f32 %v2927_v4, %v2912_v60  ;;  %v3033_v60 = vld [vmem:[%s6713_s12 + $0x18] sm:$0xff] }
 0xa48   : > { %v2932_v6 = vmul.f32 0.7978846, %v2930_v5 }
 0xa49   : > { %v2931_v7 = vmul.f32 0.7978846, %v2929_v31  ;;  %v3034_v31 = vld [vmem:[%s6714_s5] sm:$0xff] }
 0xa4a   : > { %5783 = vtanh.f32 %v2932_v6 }
 0xa4b   : > { %5785 = vtanh.f32 %v2931_v7 }
 0xa54   : > { %v5784_v8 = vpop.eup %5783 }
 0xa55   : > { %v5786_v9 = vpop.eup %5785  ;;  %v2936_v32 = vadd.f32 1.0, %v5784_v8 }
 0xa56   : > { %v2935_v12 = vadd.f32 1.0, %v5786_v9 }
 0xa57   : > { %v2938_v13 = vmul.f32 %v2936_v32, %v2922_v10 }
 0xa58   : > { %v2937_v14 = vmul.f32 %v2935_v12, %v2921_v11 }
 0xa59   : > { %v2940_v15 = vmul.f32 %v5355_v56, %v2938_v13  ;;  %v3035_v13 = vld [vmem:[%s6714_s5 + $0x8] sm:$0xff] }
 0xa5a   : > { %v2939_v16 = vmul.f32 %v2937_v14, %v2837_v59  ;;  %v3032_v59 = vld [vmem:[%s6713_s12 + $0x10] sm:$0xff] }
 0xa5b   : > { %v3036_v14 = vld [vmem:[%s6714_s5 + $0x10] sm:$0xff] }
 0xa5c   : > { %5399 = vmatprep.mubr.f32.mxu1 %v2939_v16  ;;  %v3038_v16 = vld [vmem:[%s6715_s3] sm:$0xff] }
 0xa5d   : > { %5400 = vmatmul.mubr.f32.vlgmr.msra.gmra.mrb[14].mxu1 %v2940_v15  ;;  %v3037_v15 = vld [vmem:[%s6714_s5 + $0x18] sm:$0xff]  ;;  %s5944_s5 = smov [#allocation2]  }
 0xb30   : > { %v5401_v17 = vpop.f32.mrb[14].mxu1 }
 0xb31   : > { %3020 = vrot.lane.b32.xlu0 %v5401_v17, %s6662_s10  ;;  %v3007_v18 = vpop.f32.mrb[15].mxu1  ;;  %v3039_v17 = vld [vmem:[%s6715_s3 + $0x8] sm:$0xff] }
 0xb32   : > { %3018 = vrot.lane.b32.xlu1 %v3007_v18, %s6662_s10  ;;  %s6707_s10 = smov 96   ;;  %v3040_v18 = vld [vmem:[%s6715_s3 + $0x10] sm:$0xff] }
 0xba3   : > { %v3021_v19 = vpop.permute.xlu0 %3020 }
 0xba4   : > { %v3025_v20 = vadd.f32 %v3021_v19, %v6180_v2  ;;  %v3019_v21 = vpop.permute.xlu1 %3018  ;;  %v3041_v19 = vld [vmem:[%s6715_s3 + $0x18] sm:$0xff]  ;;  %s4800_s3 = scalar_lea.sflag [#allocation3], %s6373_s1 }
 0xba5   : > { %v3024_v22 = vadd.f32 %v3019_v21, %v6170_v0 }
 0xba6   : > { %v4793_v23 = vsel %vm1059_vm0, %v6327_v47, %v3025_v20 }
 0xba7   : > { %4796 = vst.msk [vmem:[%s6380_s26 + $0x8] sm:$0xff] %vm4794_vm5, %v4793_v23  ;;  %v4792_v24 = vsel %vm1059_vm0, %v6330_v48, %v3024_v22  ;;  %3066 = vrot.lane.b32.xlu1 %v3024_v22, %s6707_s10  ;;  %v5941_v23 = vmov 0.0  }
 0xba8   : > { %4795 = vst.msk [vmem:[%s6380_s26] sm:$0xff] %vm4794_vm5, %v4792_v24  ;;  %5440 = vmatprep.subr.mxu1 %v5941_v23  ;;  %5442 = vmatprep.mubr.msk.f32.mxu1 %vm5942_vm6, %v5941_v23 }
 0xbab   : > { %3068 = vrot.lane.b32.xlu1 %v3025_v20, %s6707_s10 }
 0xc19   : > { %v3067_v0 = vpop.permute.xlu1 %3066 }
 0xc1a   : > { %v3072_v2 = vsel %vm1059_vm0, %v3067_v0, 0.0 }
 0xc1b   : > { %3073 = vadd.xlane.f32.xlu0 %v3072_v2 }
 0xc1d   : > { %v3069_v47 = vpop.permute.xlu1 %3068 }
 0xc1e   : > { %v3075_v25 = vsel %vm1059_vm0, %v3069_v47, 0.0 }
 0xc1f   : > { %3076 = vadd.xlane.f32.xlu1 %v3075_v25 }
 0xca8   : > { %v3074_v26 = vpop.xlane.xlu0 %3073 }
 0xca9   : > { %v3078_v27 = vmul.f32 0.03125, %v3074_v26 }
 0xcab   : > { %v3080_v28 = vsub.f32 %v3024_v22, %v3078_v27 }
 0xcac   : > { %v3077_v48 = vpop.xlane.xlu1 %3076 }
 0xcad   : > { %v3079_v29 = vmul.f32 0.03125, %v3077_v48  ;;  %v3082_v30 = vmul.f32 %v3080_v28, %v3080_v28 }
 0xcaf   : > { %v3081_v33 = vsub.f32 %v3025_v20, %v3079_v29  ;;  %3086 = vrot.lane.b32.xlu0 %v3082_v30, %s6707_s10 }
 0xcb1   : > { %v3083_v35 = vmul.f32 %v3081_v33, %v3081_v33 }
 0xcb3   : > { %3051 = vrot.lane.b32.xlu0 %v5058_v34, %s6712_s9  ;;  %3088 = vrot.lane.b32.xlu1 %v3083_v35, %s6707_s10 }
 0xcb7   : > { %3060 = vrot.lane.b32.xlu1 %v5059_v36, %s6712_s9 }
 0xd21   : > { %v3087_v37 = vpop.permute.xlu0 %3086 }
 0xd22   : > { %v3092_v38 = vsel %vm1059_vm0, %v3087_v37, 0.0 }
 0xd23   : > { %3093 = vadd.xlane.f32.xlu0 %v3092_v38 }
 0xd25   : > { %v3089_v39 = vpop.permute.xlu1 %3088  ;;  %v3052_v42 = vpop.permute.xlu0 %3051 }
 0xd26   : > { %v3095_v40 = vsel %vm1059_vm0, %v3089_v39, 0.0  ;;  %v3054_v45 = vmul.f32 %v3052_v42, %v6207_v54 }
 0xd27   : > { %3096 = vadd.xlane.f32.xlu1 %v3095_v40 }
 0xd29   : > { %v3061_v44 = vpop.permute.xlu1 %3060 }
 0xd2a   : > { %v3063_v46 = vadd.f32 %v3061_v44, %v3054_v45 }
 0xd38   : > { %3121 = vrot.lane.b32.xlu1 %v5061_v41, %s6712_s9 }
 0xd39   : > { %3111 = vrot.lane.b32.xlu0 %v5060_v43, %s6712_s9 }
 0xd3d   : > { %3127 = vrot.lane.b32.xlu0 %v3063_v46, %s6707_s10 }
 0xdb0   : > { %v3094_v50 = vpop.xlane.xlu0 %3093 }
 0xdb1   : > { %v3098_v51 = vmul.f32 0.03125, %v3094_v50 }
 0xdb3   : > { %v3100_v52 = vadd.f32 1e-05, %v3098_v51 }
 0xdb4   : > { %v3112_v53 = vpop.permute.xlu0 %3111  ;;  %v3097_v55 = vpop.xlane.xlu1 %3096 }
 0xdb5   : > { %5787 = vrsqrt.f32 %v3100_v52  ;;  %v3099_v56 = vmul.f32 0.03125, %v3097_v55 }
 0xdb7   : > { %v3101_v57 = vadd.f32 1e-05, %v3099_v56 }
 0xdb8   : > { %v3128_v54 = vpop.permute.xlu0 %3127  ;;  %v3122_v5 = vpop.permute.xlu1 %3121 }
 0xdb9   : > { %5789 = vrsqrt.f32 %v3101_v57  ;;  %5402 = vmatprep.subr.msk.mxu0 %vm1059_vm0, %v3128_v54 }
 0xdba   : > { %5403 = vmatpush3.xpose.msk.msra.mxu0 %vm1059_vm0, %v3128_v54 }
 0xdbd   : > { %5405 = vmatmul.mubr.msk.f32.vlgmr.msra.gmra.mrb[26].mxu0 %vm1059_vm0, %v3031_v58 }
 0xdbe   : > { %5407 = vmatprep.mubr.msk.f32.mxu0 %vm1059_vm0, %v3032_v59 }
 0xdbf   : > { %v5788_v62 = vpop.eup %5787 }
 0xdc0   : > { %v3104_v63 = vmul.f32 %v5788_v62, %v3080_v28 }
 0xdc1   : > { %5408 = vmatmul.mubr.msk.f32.gmra.mrb[28].mxu0 %vm1059_vm0, %v3033_v60 }
 0xdc2   : > { %v3114_v3 = vmul.f32 %v3112_v53, %v3104_v63  ;;  %5414 = vmatprep.mubr.msk.f32.mxu0 %vm1059_vm0, %v3034_v31 }
 0xdc3   : > { %v5790_v1 = vpop.eup %5789 }
 0xdc4   : > { %v3105_v4 = vmul.f32 %v5790_v1, %v3081_v33  ;;  %v3124_v7 = vadd.f32 %v3122_v5, %v3114_v3 }
 0xdc6   : > { %v3115_v6 = vmul.f32 %v3112_v53, %v3105_v4 }
 0xdc8   : > { %v3125_v8 = vadd.f32 %v3122_v5, %v3115_v6 }
 0xdca   : > { %v5736_v9 = vpack.i.bf16 %v3125_v8, %v3124_v7 }
 0xdcc   : > { %5737 = vrot.lane.b32.xlu1 %v5736_v9, %s6707_s10  ;;  %s6717_s10 = sshll.u32 %s6163_s18, 3  ;;  %s6718_s18 = sld [smem:[#allocation24_spill]] }
 0xdcd   : > { %s1021_s7 = scalar_lea.vmem %s6716_s8, %s6717_s10  ;;  %s6719_s8 = sld [smem:[#allocation27_spill]] }
 0xdce   : > { %v1029_v34 = vld [vmem:[%s1021_s7] sm:$0xff]  ;;  %s6721_s10 = sld [smem:[#allocation26_spill]]  ;;  %s4818_s7 = sshll.u32 %s6380_s26, 4  ;;  %s6583_s7 = int_to_ptr.vmem [resolvable:$true] %s4818_s7 }
 0xdcf   : > { %vm1030_vm8 = vcmp.gt.f32.partialorder %v1029_v34, 0.0 }
 0xe3e   : > { %v5738_v10 = vpop.permute.xlu1 %5737 }
 0xe3f   : > { %v5740_v32 = vunpack.i.h.bf16 %v5738_v10  ;;  %v5739_v11 = vunpack.i.l.bf16 %v5738_v10 }
 0xe41   : > { %v5601_v12 = vpack.c.bf16 %v5740_v32, %v5739_v11 }
 0xe43   : > { %5603 = vmatprep.subr.msk.bf16.mxu0 %vm6213_vm1, %v5601_v12 }
 0xe44   : > { %5606 = vmatpush3.bf16.xpose.msk.msra.mxu0 %vm6213_vm1, %v5601_v12 }
 0xe45   : > { %5609 = vmatprep.subr.msk.bf16.mxu0 %vm6213_vm1, %v5601_v12 }
 0xe4b   : > { %5415 = vmatmul.mubr.msk.f32.vlgmr.msra.gmra.mrb[30].mxu0 %vm1059_vm0, %v3035_v13 }
 0xe4c   : > { %5612 = vmatpush3.bf16.xpose.msk.msra.mxu0 %vm6213_vm1, %v5601_v12  ;;  %5417 = vmatprep.mubr.msk.f32.mxu0 %vm1059_vm0, %v3036_v14 }
 0xe4d   : > { %5430 = vmatprep.subr.mxu0 %v5941_v23 }
 0xe4f   : > { %5418 = vmatmul.mubr.msk.f32.gmra.mrb[32].mxu0 %vm1059_vm0, %v3037_v15 }
 0xe50   : > { %5424 = vmatprep.mubr.msk.f32.mxu0 %vm1059_vm0, %v3038_v16 }
 0xe53   : > { %5425 = vmatmul.mubr.msk.f32.vlgmr.msra.gmra.mrb[34].mxu0 %vm1059_vm0, %v3039_v17 }
 0xe54   : > { %5427 = vmatprep.mubr.msk.f32.mxu0 %vm1059_vm0, %v3040_v18 }
 0xe57   : > { %5428 = vmatmul.mubr.msk.f32.gmra.mrb[36].mxu0 %vm1059_vm0, %v3041_v19 }
 0xe58   : > { %5432 = vmatprep.mubr.msk.f32.mxu0 %vm5942_vm6, %v5941_v23 }
 0xe90   : > { %v5406_v20 = vpop.f32.mrb[26].mxu0 }
 0xe91   : > { %v3209_v61 = vpop.f32.mrb[27].mxu0  ;;  %3464 = vxpose.xlu1.b32.start.end [1/1] (short) (narrow) %v5406_v20, 8 }
 0xe92   : > { %3432 = vxpose.xlu0.b32.start.end [1/1] (short) (narrow) %v3209_v61, 8 }
 0xe94   : > { %v5409_v21 = vpop.f32.mrb[28].mxu0 }
 0xe95   : > { %v3219_v22 = vpop.f32.mrb[29].mxu0 }
 0xe96   : > { %3496 = vxpose.xlu0.b32.start.end [1/1] (short) (narrow) %v3219_v22, 8 }
 0xe9a   : > { %3528 = vxpose.xlu0.b32.start.end [1/1] (short) (narrow) %v5409_v21, 8 }
 0xf11   : > { %v3480_v25 = vpop.trf.xlu1 }
 0xf12   : > { %v3448_v24 = vpop.trf.xlu0 }
 0xf16   : > { %v3512_v47 = vpop.trf.xlu0 }
 0xf1a   : > { %v3544_v28 = vpop.trf.xlu0 }
 0xf1e   : > { %v5416_v0 = vpop.f32.mrb[30].mxu0 }
 0xf1f   : > { %v3316_v2 = vpop.f32.mrb[31].mxu0 }
 0xf20   : > { %5431 = vmatpush3.msra.mxu0 %v3316_v2  ;;  %v3042_v2 = vld [vmem:[%s6718_s18] sm:$0xff] }
 0xf21   : > { %5433 = vmatmul.mubr.msk.f32.vlgmr.msra.gmra.mrb[38].mxu0 %vm1588_vm2, %v3448_v24  ;;  %5435 = vmatprep.subr.mxu0 %v5941_v23 }
 0xf22   : > { %5436 = vmatpush3.msra.mxu0 %v5416_v0  ;;  %5437 = vmatprep.mubr.msk.f32.mxu0 %vm5942_vm6, %v5941_v23  ;;  %v5419_v26 = vpop.f32.mrb[32].mxu0 }
 0xf23   : > { %v3326_v27 = vpop.f32.mrb[33].mxu0  ;;  %5445 = vmatprep.subr.mxu0 %v5941_v23 }
 0xf24   : > { %5441 = vmatpush3.msra.mxu1 %v3326_v27 }
 0xf25   : > { %5438 = vmatmul.mubr.msk.f32.vlgmr.msra.gmra.mrb[40].mxu0 %vm1588_vm2, %v3480_v25  ;;  %5443 = vmatmul.mubr.msk.f32.vlgmr.msra.gmra.mrb[16].mxu1 %vm1588_vm2, %v3512_v47  ;;  %v3043_v47 = vld [vmem:[%s6718_s18 + $0x8] sm:$0xff]  ;;  %v3044_v25 = vld [vmem:[%s6718_s18 + $0x10] sm:$0xff] }
 0xf26   : > { %5446 = vmatpush3.msra.mxu0 %v5419_v26  ;;  %5447 = vmatprep.mubr.msk.f32.mxu0 %vm5942_vm6, %v5941_v23  ;;  %v5426_v48 = vpop.f32.mrb[34].mxu0 }
 0xf27   : > { %v3413_v29 = vpop.f32.mrb[35].mxu0  ;;  %5450 = vmatprep.subr.mxu1 %v5941_v23  ;;  %5455 = vmatprep.subr.mxu0 %v5941_v23 }
 0xf28   : > { %5452 = vmatprep.mubr.msk.f32.mxu1 %vm5942_vm6, %v5941_v23 }
 0xf29   : > { %5448 = vmatmul.mubr.msk.f32.vlgmr.msra.gmra.mrb[42].mxu0 %vm1588_vm2, %v3544_v28  ;;  %v3045_v28 = vld [vmem:[%s6718_s18 + $0x18] sm:$0xff] }
 0xf2a   : > { %v6461_v30 = vpop.f32.mrb[36].mxu0  ;;  %5457 = vmatprep.mubr.msk.f32.mxu0 %vm5942_vm6, %v5941_v23 }
 0xf2b   : > { %v6465_v33 = vpop.f32.mrb[37].mxu0  ;;  %5451 = vmatpush3.xpose.msk.msra.mxu1 %vm3862_vm7, %v3413_v29 }
 0xf2c   : > { %5460 = vmatprep.subr.mxu1 %v5941_v23 }
 0xf2d   : > { %5456 = vmatpush3.xpose.msk.msra.mxu0 %vm3862_vm7, %v5426_v48 }
 0xf2e   : > { %5465 = vmatprep.subr.mxu0 %v5941_v23 }
 0xff4   : > { %v3629_v35 = vpop.f32.mrb[38].mxu0 }
 0xff5   : > { %v3852_v36 = vmul.f32 0.35355338, %v3629_v35  ;;  %v5434_v37 = vpop.f32.mrb[39].mxu0 }
 0xff7   : > { %v3858_v38 = vsel %vm1030_vm8, %v3852_v36, -1e+09 }
 0xff8   : > { %v3702_v39 = vpop.f32.mrb[40].mxu0  ;;  %v3863_v40 = vsel %vm3862_vm7, %v3858_v38, -inf  ;;  %v3775_v41 = vpop.f32.mrb[16].mxu1 }
 0xff9   : > { %v3853_v42 = vmul.f32 0.35355338, %v3702_v39  ;;  %3864 = vmax.xlane.f32.xlu0 %v3863_v40  ;;  %v5439_v43 = vpop.f32.mrb[41].mxu0  ;;  %v3854_v44 = vmul.f32 0.35355338, %v3775_v41  ;;  %v5444_v45 = vpop.f32.mrb[17].mxu1 }
 0xffb   : > { %v3859_v46 = vsel %vm1030_vm8, %v3853_v42, -1e+09  ;;  %v3860_v49 = vsel %vm1030_vm8, %v3854_v44, -1e+09 }
 0xffc   : > { %v3848_v50 = vpop.f32.mrb[42].mxu0  ;;  %v3866_v51 = vsel %vm3862_vm7, %v3859_v46, -inf  ;;  %v3869_v56 = vsel %vm3862_vm7, %v3860_v49, -inf }
 0xffd   : > { %v3855_v52 = vmul.f32 0.35355338, %v3848_v50  ;;  %3867 = vmax.xlane.f32.xlu1 %v3866_v51  ;;  %v5449_v53 = vpop.f32.mrb[43].mxu0 }
 0xffe   : > { %v6527_v53 = vld [vmem:[%s6175_s11] sm:$0xff]  ;;  %s6720_s11 = sld [smem:[#allocation25_spill]] }
 0xfff   : > { %v3861_v55 = vsel %vm1030_vm8, %v3855_v52, -1e+09 }
0x1000   : > { %v3872_v57 = vsel %vm3862_vm7, %v3861_v55, -inf }
0x1001   : > { %3870 = vmax.xlane.f32.xlu1 %v3869_v56  ;;  %3873 = vmax.xlane.f32.xlu0 %v3872_v57 }
0x1086   : > { %v3865_v54 = vpop.xlane.xlu0 %3864 }
0x1087   : > { %v3875_v58 = vsub.f32 %v3858_v38, %v3865_v54 }
0x1089   : > { %v3879_v59 = vmul.f32 1.442695, %v3875_v58 }
0x108a   : > { %v3868_v60 = vpop.xlane.xlu1 %3867 }
0x108b   : > { %5791 = vpow2.f32 %v3879_v59  ;;  %v3876_v62 = vsub.f32 %v3859_v46, %v3868_v60 }
0x108d   : > { %v3881_v63 = vmul.f32 1.442695, %v3876_v62  ;;  %v4513_v62 = vld [vmem:[%s6719_s8] sm:$0xff] }
0x108e   : > { %v3871_v1 = vpop.xlane.xlu1 %3870  ;;  %v3874_v3 = vpop.xlane.xlu0 %3873 }
0x108f   : > { %5793 = vpow2.f32 %v3881_v63  ;;  %v3877_v4 = vsub.f32 %v3860_v49, %v3871_v1  ;;  %v3878_v5 = vsub.f32 %v3861_v55, %v3874_v3  ;;  %v4514_v63 = vld [vmem:[%s6719_s8 + $0x8] sm:$0xff]  ;;  %v4517_v1 = vld [vmem:[%s6096_s30] sm:$0xff] }
0x1090   : > { %v5614_v3 = vpack.c.bf16 %v4514_v63, %v4513_v62 }
0x1091   : > { %v3883_v31 = vmul.f32 1.442695, %v3877_v4  ;;  %v3885_v6 = vmul.f32 1.442695, %v3878_v5  ;;  %v4518_v4 = vld [vmem:[%s6096_s30 + $0x8] sm:$0xff]  ;;  %v5943_v5 = vmov 0.0|0.0  }
0x1093   : > { %5795 = vpow2.f32 %v3883_v31  ;;  %v5620_v31 = vpack.c.bf16 %v4518_v4, %v4517_v1 }
0x1094   : > { %5797 = vpow2.f32 %v3885_v6  ;;  %v4515_v6 = vld [vmem:[%s6719_s8 + $0x10] sm:$0xff] }
0x1095   : > { %v5792_v7 = vpop.eup %5791 }
0x1096   : > { %v3887_v8 = vsel %vm3862_vm7, %v5792_v7, 0.0 }
0x1097   : > { %3888 = vadd.xlane.f32.xlu1 %v3887_v8  ;;  %v4519_v8 = vld [vmem:[%s6096_s30 + $0x10] sm:$0xff] }
0x1099   : > { %v5794_v9 = vpop.eup %5793 }
0x109a   : > { %v3890_v10 = vsel %vm3862_vm7, %v5794_v9, 0.0 }
0x109b   : > { %3891 = vadd.xlane.f32.xlu0 %v3890_v10  ;;  %v4520_v10 = vld [vmem:[%s6096_s30 + $0x18] sm:$0xff] }
0x109d   : > { %v5796_v32 = vpop.eup %5795 }
0x109e   : > { %v5798_v11 = vpop.eup %5797  ;;  %v3893_v12 = vsel %vm3862_vm7, %v5796_v32, 0.0 }
0x109f   : > { %3894 = vadd.xlane.f32.xlu1 %v3893_v12  ;;  %v3896_v13 = vsel %vm3862_vm7, %v5798_v11, 0.0 }
0x10a0   : > { %3897 = vadd.xlane.f32.xlu0 %v3896_v13 }
0x1124   : > { %v3889_v14 = vpop.xlane.xlu1 %3888 }
0x1125   : > { %5799 = vrcp.f32 %v3889_v14 }
0x1128   : > { %v3892_v15 = vpop.xlane.xlu0 %3891 }
0x1129   : > { %5801 = vrcp.f32 %v3892_v15  ;;  %v5095_v15 = vld [vmem:[%s6720_s11] ss:$0 sm:$0xff]  ;;  %s5108_s11 = sshll.u32 %s6134_s0, 8 }
0x112c   : > { %v3895_v16 = vpop.xlane.xlu1 %3894 }
0x112d   : > { %5803 = vrcp.f32 %v3895_v16  ;;  %v3898_v17 = vpop.xlane.xlu0 %3897 }
0x112e   : > { %5805 = vrcp.f32 %v3898_v17  ;;  %v4521_v17 = vld [vmem:[%s6692_s4] sm:$0xff] }
0x112f   : > { %v5800_v18 = vpop.eup %5799 }
0x1130   : > { %v3903_v19 = vmul.f32 %v5800_v18, %v5792_v7  ;;  %v4516_v7 = vld [vmem:[%s6719_s8 + $0x18] sm:$0xff]  ;;  %v4522_v18 = vld [vmem:[%s6692_s4 + $0x8] sm:$0xff]  ;;  %s5816_s8 = sshll.u32 %s5944_s5, 4  ;;  %s5817_s8 = int_to_ptr.vmem [resolvable:$false] %s5816_s8 }
0x1131   : > { %s5818_s12 = scalar_lea.vmem %s5817_s8, 512  ;;  %p5819_p0 = scmp.lt.s32.totalorder %s6583_s7, %s5817_s8 }
0x1132   : > { %5453 = vmatmul.mubr.msk.f32.vlgmr.msra.gmra.mrb[18].mxu1 %vm3862_vm7, %v3903_v19  ;;  %v5096_v19 = vld [vmem:[%s6721_s10] ss:$0 sm:$0xff]  ;;  %s6581_s10 = scalar_lea.hbm %s6106_s17, %s5108_s11 }
0x1133   : > { %v5802_v20 = vpop.eup %5801  ;;  %5461 = vmatpush3.xpose.msk.msra.mxu1 %vm3862_vm7, %v6465_v33  ;;  %5462 = vmatprep.mubr.msk.f32.mxu1 %vm5942_vm6, %v5941_v23 }
0x1134   : > { %v3904_v61 = vmul.f32 %v5802_v20, %v5794_v9  ;;  %5470 = vmatprep.subr.mxu1 %v5941_v23  ;;  %v5617_v9 = vpack.c.bf16 %v4516_v7, %v4515_v6 }
0x1136   : > { %5458 = vmatmul.mubr.msk.f32.vlgmr.msra.gmra.mrb[44].mxu0 %vm3862_vm7, %v3904_v61  ;;  %v5626_v61 = vpack.c.bf16 %v4522_v18, %v4521_v17 }
0x1137   : > { %v5804_v21 = vpop.eup %5803  ;;  %5466 = vmatpush3.xpose.msk.msra.mxu0 %vm3862_vm7, %v6461_v30  ;;  %5467 = vmatprep.mubr.msk.f32.mxu0 %vm5942_vm6, %v5941_v23 }
0x1138   : > { %v5806_v22 = vpop.eup %5805  ;;  %v3905_v24 = vmul.f32 %v5804_v21, %v5796_v32  ;;  %5475 = vmatprep.subr.mxu0 %v5941_v23  ;;  %v5623_v32 = vpack.c.bf16 %v4520_v10, %v4519_v8 }
0x1139   : > { %v3906_v0 = vmul.f32 %v5806_v22, %v5798_v11  ;;  %v4523_v22 = vld [vmem:[%s6692_s4 + $0x10] sm:$0xff] }
0x113a   : > { %5463 = vmatmul.mubr.msk.f32.vlgmr.msra.gmra.mrb[20].mxu1 %vm3862_vm7, %v3905_v24  ;;  %v4524_v24 = vld [vmem:[%s6692_s4 + $0x18] sm:$0xff] }
0x113b   : > { %5468 = vmatmul.mubr.msk.f32.vlgmr.msra.gmra.mrb[46].mxu0 %vm3862_vm7, %v3906_v0  ;;  %5472 = vmatprep.mubr.msk.f32.mxu1 %vm5942_vm6, %v5941_v23  ;;  %v5629_v0 = vpack.c.bf16 %v4524_v24, %v4523_v22 }
0x113c   : > { %5477 = vmatprep.mubr.msk.f32.mxu0 %vm5942_vm6, %v5941_v23  ;;  %5471 = vmatpush3.msra.mxu1 %v3042_v2  ;;  %v4525_v2 = vld [vmem:[%s6692_s4 + $0x20] sm:$0xff] }
0x113d   : > { %5480 = vmatprep.subr.mxu1 %v5941_v23  ;;  %5476 = vmatpush3.msra.mxu0 %v3043_v47  ;;  %v4526_v47 = vld [vmem:[%s6692_s4 + $0x28] sm:$0xff] }
0x113e   : > { %5485 = vmatprep.subr.mxu0 %v5941_v23 }
0x1205   : > { %v3979_v26 = vpop.f32.mrb[18].mxu1 }
0x1206   : > { %v5454_v27 = vpop.f32.mrb[19].mxu1  ;;  %5473 = vmatmul.mubr.msk.f32.vlgmr.msra.gmra.mrb[22].mxu1 %vm1588_vm2, %v3979_v26  ;;  %v4528_v26 = vld [vmem:[%s6692_s4 + $0x38] sm:$0xff] }
0x1207   : > { %5481 = vmatpush3.msra.mxu1 %v3044_v25  ;;  %5482 = vmatprep.mubr.msk.f32.mxu1 %vm5942_vm6, %v5941_v23  ;;  %v5632_v25 = vpack.c.bf16 %v4526_v47, %v4525_v2 }
0x1208   : > { %5613 = vmatprep.subr.bf16.mxu1 %v5943_v5 }
0x1209   : > { %v4055_v48 = vpop.f32.mrb[44].mxu0 }
0x120a   : > { %v5459_v29 = vpop.f32.mrb[45].mxu0  ;;  %5478 = vmatmul.mubr.msk.f32.vlgmr.msra.gmra.mrb[48].mxu0 %vm1588_vm2, %v4055_v48  ;;  %v4530_v48 = vld [vmem:[%s6692_s4 + $0x48] sm:$0xff] }
0x120b   : > { %5486 = vmatpush3.msra.mxu0 %v3045_v28  ;;  %5487 = vmatprep.mubr.msk.f32.mxu0 %vm5942_vm6, %v5941_v23  ;;  %v4529_v28 = vld [vmem:[%s6692_s4 + $0x40] sm:$0xff]  ;;  %v4531_v29 = vld [vmem:[%s6692_s4 + $0x50] sm:$0xff] }
0x120c   : > { %5619 = vmatprep.subr.bf16.mxu0 %v5943_v5 }
0x120d   : > { %v4131_v30 = vpop.f32.mrb[20].mxu1 }
0x120e   : > { %v4207_v33 = vpop.f32.mrb[46].mxu0  ;;  %v5464_v34 = vpop.f32.mrb[21].mxu1  ;;  %5483 = vmatmul.mubr.msk.f32.vlgmr.msra.gmra.mrb[24].mxu1 %vm1588_vm2, %v4131_v30  ;;  %v5638_v30 = vpack.c.bf16 %v4530_v48, %v4529_v28 }
0x120f   : > { %v5469_v35 = vpop.f32.mrb[47].mxu0  ;;  %5488 = vmatmul.mubr.msk.f32.vlgmr.msra.gmra.mrb[50].mxu0 %vm1588_vm2, %v4207_v33  ;;  %5498 = vmatprep.mubr.msk.f32.mxu1 %vm5942_vm6, %v5941_v23  ;;  %v4532_v33 = vld [vmem:[%s6692_s4 + $0x58] sm:$0xff] }
0x1210   : > { %5509 = vmatprep.mubr.msk.f32.mxu0 %vm5942_vm6, %v5941_v23  ;;  %5615 = vmatpush3.bf16.msra.mxu1 %v5614_v3  ;;  %v5641_v34 = vpack.c.bf16 %v4532_v33, %v4531_v29  ;;  %v4533_v35 = vld [vmem:[%s6692_s4 + $0x60] sm:$0xff] }
0x1211   : > { %5621 = vmatpush3.bf16.msra.mxu0 %v5620_v31  ;;  %5616 = vmatprep.subr.bf16.mxu1 %v5943_v5 }
0x1212   : > { %5622 = vmatprep.subr.bf16.mxu0 %v5943_v5 }
0x1214   : > { %5618 = vmatpush3.bf16.msra.mxu1 %v5617_v9 }
0x1215   : > { %5624 = vmatpush3.bf16.msra.mxu0 %v5623_v32  ;;  %5625 = vmatprep.subr.bf16.mxu1 %v5943_v5 }
0x12d9   : > { %v4280_v36 = vpop.f32.mrb[22].mxu1 }
0x12da   : > { %v5474_v37 = vpop.f32.mrb[23].mxu1  ;;  %v4503_v39 = vsel %vm1059_vm0, %v4280_v36, 0.0  ;;  %v4534_v36 = vld [vmem:[%s6692_s4 + $0x68] sm:$0xff] }
0x12db   : > { %v5644_v37 = vpack.c.bf16 %v4534_v36, %v4533_v35 }
0x12dd   : > { %v4353_v38 = vpop.f32.mrb[48].mxu0 }
0x12de   : > { %v4504_v40 = vsel %vm1059_vm0, %v4353_v38, 0.0  ;;  %v5479_v41 = vpop.f32.mrb[49].mxu0  ;;  %v4535_v38 = vld [vmem:[%s6692_s4 + $0x70] sm:$0xff] }
0x12df   : > { %v4505_v42 = vadd.f32 %v4504_v40, %v4503_v39  ;;  %v4536_v39 = vld [vmem:[%s6692_s4 + $0x78] sm:$0xff] }
0x12e0   : > { %v5647_v40 = vpack.c.bf16 %v4536_v39, %v4535_v38 }
0x12e1   : > { %v4426_v43 = vpop.f32.mrb[24].mxu1 }
0x12e2   : > { %v4506_v44 = vsel %vm1059_vm0, %v4426_v43, 0.0  ;;  %v4499_v45 = vpop.f32.mrb[50].mxu0  ;;  %v5484_v46 = vpop.f32.mrb[25].mxu1 }
0x12e3   : > { %v4507_v49 = vadd.f32 %v4506_v44, %v4505_v42  ;;  %v5489_v50 = vpop.f32.mrb[51].mxu0  ;;  %v4508_v51 = vsel %vm1059_vm0, %v4499_v45, 0.0 }
0x12e5   : > { %v4509_v52 = vadd.f32 %v4508_v51, %v4507_v49 }
0x12e7   : > { %v6530_v55 = vadd.f32 %v6527_v53, %v4509_v52 }
0x12e9   : > { %v4537_v56 = vsel %vm1059_vm0, %v6530_v55, 0.0 }
0x12ea   : > { %4538 = vadd.xlane.f32.xlu1 %v4537_v56 }
0x1377   : > { %v4539_v57 = vpop.xlane.xlu1 %4538 }
0x1378   : > { %v4540_v54 = vmul.f32 0.03125, %v4539_v57 }
0x137a   : > { %v4541_v58 = vsub.f32 %v6530_v55, %v4540_v54 }
0x137c   : > { %v4542_v59 = vmul.f32 %v4541_v58, %v4541_v58 }
0x137e   : > { %v4543_v60 = vsel %vm1059_vm0, %v4542_v59, 0.0 }
0x137f   : > { %4544 = vadd.xlane.f32.xlu0 %v4543_v60 }
0x140c   : > { %v4545_v11 = vpop.xlane.xlu0 %4544 }
0x140d   : > { %v4546_v12 = vmul.f32 0.03125, %v4545_v11 }
0x140f   : > { %v4547_v13 = vadd.f32 1e-05, %v4546_v12 }
0x1411   : > { %5807 = vrsqrt.f32 %v4547_v13 }
0x141b   : > { %v5808_v14 = vpop.eup %5807 }
0x141c   : > { %v4549_v16 = vmul.f32 %v5808_v14, %v4541_v58 }
0x141e   : > { %v4556_v20 = vmul.f32 %v5095_v15, %v4549_v16 }
0x1420   : > { %v4563_v21 = vadd.f32 %v5096_v19, %v4556_v20 }
0x1422   : > { %5499 = vmatmul.mubr.msk.f32.vlgmr.msra.gmra.mrb[26].mxu1 %vm1059_vm0, %v4563_v21  ;;  %5510 = vmatmul.mubr.msk.f32.vlgmr.msra.gmra.mrb[52].mxu0 %vm1059_vm0, %v4563_v21 }
0x1423   : > { %5627 = vmatpush3.bf16.msra.mxu1 %v5626_v61  ;;  %5544 = vmatprep.mubr.msk.f32.mxu1 %vm5942_vm6, %v5941_v23  ;;  %v4527_v23 = vld [vmem:[%s6692_s4 + $0x30] sm:$0xff]  ;;  %s5812_s4 = scalar_lea.vmem %s6583_s7, 256 }
0x1424   : > { %5628 = vmatprep.subr.bf16.mxu1 %v5943_v5  ;;  %v5635_v27 = vpack.c.bf16 %v4528_v26, %v4527_v23  ;;  %p5813_p11 = scmp.ne.s32.totalorder %s6583_s7, %s5812_s4  ;;  %p5820_p1 = scmp.lt.s32.totalorder %s5818_s12, %s5812_s4 }
0x1426   : > { %p5814_p12 = pnand %p5813_p11, %p6151_p5  ;;  %p5821_p2 = por %p5820_p1, %p5819_p0 }
0x1427   : > { %5630 = vmatpush3.bf16.msra.mxu1 %v5629_v0 }
0x1428   : > { %5631 = vmatprep.subr.bf16.mxu1 %v5943_v5  ;;  %p5815_p13 = pneg %p5814_p12 }
0x142a   : > { %p5822_p3 = pnand %p5821_p2, %p5815_p13 }
0x142b   : > { %5633 = vmatpush3.bf16.msra.mxu1 %v5632_v25 }
0x142c   : > { %5634 = vmatprep.subr.bf16.mxu1 %v5943_v5 }
0x142f   : > { %5636 = vmatpush3.bf16.msra.mxu1 %v5635_v27 }
0x1430   : > { %5637 = vmatprep.subr.bf16.mxu1 %v5943_v5 }
0x1433   : > { %5639 = vmatpush3.bf16.msra.mxu1 %v5638_v30 }
0x1434   : > { %5640 = vmatprep.subr.bf16.mxu1 %v5943_v5 }
0x1437   : > { %5642 = vmatpush3.bf16.msra.mxu1 %v5641_v34 }
0x1438   : > { %5643 = vmatprep.subr.bf16.mxu1 %v5943_v5 }
0x143b   : > { %5645 = vmatpush3.bf16.msra.mxu1 %v5644_v37 }
0x143c   : > { %5646 = vmatprep.subr.bf16.mxu1 %v5943_v5 }
0x143f   : > { %5648 = vmatpush3.bf16.msra.mxu1 %v5647_v40 }
0x14f5   : > { %v4633_v41 = vpop.f32.mrb[26].mxu1  ;;  %v4703_v42 = vpop.f32.mrb[52].mxu0 }
0x14f6   : > { %v4708_v43 = vmul.f32 0.044715, %v4703_v42  ;;  %v5500_v44 = vpop.f32.mrb[27].mxu1  ;;  %v5511_v45 = vpop.f32.mrb[53].mxu0  ;;  %v4707_v56 = vmul.f32 0.5, %v4703_v42 }
0x14f8   : > { %v4709_v46 = vmul.f32 %v4708_v43, %v4703_v42 }
0x14fa   : > { %v4710_v49 = vmul.f32 %v4709_v46, %v4703_v42 }
0x14fc   : > { %v4711_v50 = vadd.f32 %v4710_v49, %v4703_v42 }
0x14fe   : > { %v4712_v51 = vmul.f32 0.7978846, %v4711_v50 }
0x1500   : > { %5809 = vtanh.f32 %v4712_v51 }
0x150a   : > { %v5810_v52 = vpop.eup %5809 }
0x150b   : > { %v4714_v57 = vadd.f32 1.0, %v5810_v52 }
0x150d   : > { %v4715_v54 = vmul.f32 %v4714_v57, %v4707_v56 }
0x150f   : > { %v4716_v58 = vmul.f32 %v4715_v54, %v4633_v41 }
0x1511   : > { %5545 = vmatmul.mubr.f32.vlgmr.msra.gmra.mrb[28].mxu1 %v4716_v58 }
0x1512   : > { %5825 = shalt.err (!%p5822_p3)
}
0x1513   : > { %s5826_s26 = scalar_lea.hbm %s6581_s10, 256  ;;  %s5830_s5 = scalar_lea.hbm %s6106_s17, 512 }
0x1514   : > { %p5827_p4 = scmp.ne.s32.totalorder %s6581_s10, %s5826_s26  ;;  %p5831_p9 = scmp.lt.u32.totalorder %s6581_s10, %s6106_s17 }
0x1515   : > { %p5832_p10 = scmp.lt.u32.totalorder %s5830_s5, %s5826_s26  ;;  %p5834_p12 = scmp.lt.u32.totalorder %s5826_s26, %s6581_s10 }
0x1516   : > { %p5828_p7 = pnand %p5827_p4, %p6151_p5 }
0x1517   : > { %p5833_p11 = por %p5832_p10, %p5831_p9 }
0x1518   : > { %p5829_p8 = pneg %p5828_p7 }
0x1519   : > { %p5835_p0 = por %p5834_p12, %p5833_p11 }
0x151b   : > { %p5836_p13 = pnand %p5835_p0, %p5829_p8 }
0x151d   : > { %5839 = shalt.err (!%p5836_p13)
}
0x151e   : > { %s5945_s12 = smov 128   ;;  %s5946_s4 = smov 8  }
0x151f   : > { %5649 = dma.vmem_to_hbm [thread:$0]  (%p6151_p5), %s6583_s7, 256, %s6581_s10, %s4800_s3, %s5945_s12, %s5945_s12, %s5946_s4  }
0x1520   : > { %s4997_s8 = sshll.u32 %s6373_s1, 3  ;;  %s5103_s11 = sshll.u32 %s6134_s0, 7 }
0x1521   : > { %s1003_s26 = scalar_lea.vmem [#allocation4], %s4997_s8  ;;  %s6610_s13 = scalar_lea.hbm %s6111_s6, %s5103_s11 }
0x1522   : > { %s4834_s5 = sshll.u32 %s1003_s26, 4  ;;  %s5947_s0 = smov [#allocation4]   ;;  %s6612_s5 = int_to_ptr.vmem [resolvable:$true] %s4834_s5 }
0x1523   : > { %s5840_s3 = scalar_lea.vmem %s6612_s5, 128  ;;  %s5844_s7 = sshll.u32 %s5947_s0, 4  ;;  %s5845_s7 = int_to_ptr.vmem [resolvable:$false] %s5844_s7 }
0x1524   : > { %p5841_p1 = scmp.ne.s32.totalorder %s6612_s5, %s5840_s3  ;;  %s5846_s10 = scalar_lea.vmem %s5845_s7, 256 }
0x1525   : > { %p5847_p4 = scmp.lt.s32.totalorder %s6612_s5, %s5845_s7  ;;  %p5848_p7 = scmp.lt.s32.totalorder %s5846_s10, %s5840_s3 }
0x1526   : > { %p5842_p2 = pnand %p5841_p1, %p6151_p5 }
0x1527   : > { %p5849_p8 = por %p5848_p7, %p5847_p4 }
0x1528   : > { %p5843_p3 = pneg %p5842_p2 }
0x152a   : > { %p5850_p9 = pnand %p5849_p8, %p5843_p3 }
0x15e4   : > { %v4783_v59 = vpop.f32.mrb[28].mxu1 }
0x15e5   : > { %4788 = vrot.lane.b32.xlu1 %v4783_v59, %s6712_s9  ;;  %v5546_v60 = vpop.f32.mrb[29].mxu1  ;;  %s4805_s9 = scalar_lea.sflag [#allocation5], %s6373_s1 }
0x1657   : > { %v4789_v62 = vpop.permute.xlu1 %4788 }
0x1658   : > { %v4791_v63 = vadd.f32 %v6527_v53, %v4789_v62 }
0x165a   : > { %v4797_v1 = vsel %vm1059_vm0, %v6530_v55, %v4791_v63 }
0x165b   : > { %4798 = vst.msk [vmem:[%s1003_s26] sm:$0xff] %vm4794_vm5, %v4797_v1 }
0x165c   : > { %5853 = shalt.err (!%p5850_p9)
}
0x165d   : > { %s5854_s1 = scalar_lea.hbm %s6610_s13, 128  ;;  %s5858_s12 = scalar_lea.hbm %s6111_s6, 256 }
0x165e   : > { %p5855_p10 = scmp.ne.s32.totalorder %s6610_s13, %s5854_s1  ;;  %p5859_p0 = scmp.lt.u32.totalorder %s6610_s13, %s6111_s6 }
0x165f   : > { %p5860_p13 = scmp.lt.u32.totalorder %s5858_s12, %s5854_s1  ;;  %p5862_p2 = scmp.lt.u32.totalorder %s5854_s1, %s6610_s13 }
0x1660   : > { %p5856_p11 = pnand %p5855_p10, %p6151_p5 }
0x1661   : > { %p5861_p1 = por %p5860_p13, %p5859_p0 }
0x1662   : > { %p5857_p12 = pneg %p5856_p11 }
0x1663   : > { %p5863_p4 = por %p5862_p2, %p5861_p1 }
0x1665   : > { %p5864_p3 = pnand %p5863_p4, %p5857_p12 }
0x1667   : > { %5867 = shalt.err (!%p5864_p3)
}
0x1668   : > { %5650 = dma.vmem_to_hbm [thread:$0]  (%p6151_p5), %s6612_s5, 128, %s6610_s13, %s4805_s9  }
0x1669 PF: > { %p5660_p7 = scmp.ge.s32.totalorder %s5906_s28, 2  ;;  %s4846_s4 = sand.u32 1, %s5894_s22  }
0x166a   : > { %s4847_s8 = scalar_lea.sflag [#allocation3], %s4846_s4 }
0x166b   : > { %p5654_p8 = pnand %p5660_p7, %p6155_p6 }
0x166d   : > { %5885 = dma.done.wait (!%p5654_p8), %s4847_s8, 256  }
0x166e   : > { %5887 = vsyncadd (!%p5654_p8), %s4847_s8, 4294967040  ;;  %s4856_s11 = scalar_lea.sflag [#allocation5], %s4846_s4 }
0x166f   : > { %5889 = dma.done.wait (!%p5654_p8), %s4856_s11, 128  }
0x1670   : > { %5891 = vsyncadd (!%p5654_p8), %s4856_s11, 4294967168  ;;  %s6722_s15 = sld [smem:[#allocation29_spill]]  ;;  %s6723_s26 = sld [smem:[#allocation30_spill]] }
0x1671   : > { %p77_p5 = scmp.ge.s32.totalorder %s6138_s2, 4   ;;  %s6724_s22 = smov %s5898_s23 }
0x1672   : > { %s6726_s28 = smov %s6138_s2 }
0x1673   :  { %79 = sbr.rel (!%p77_p5) target bundleno = 63 (0x3f), region = 232 }
0x1676   : > { %s6725_s23 = smov %s6722_s15 }
0x167a   :  { %4861 = vsyncpa [#allocation3], 1 }
0x167b   :  { %4863 = vsyncpa [#allocation3 + $0x1], 1 }
0x167c   :  { %4864 = vsyncpa [#allocation5], 1 }
0x167d   :  { %4866 = vsyncpa [#allocation5 + $0x1], 1 }

</bundles_post_ra>
